<compile_context>
chip_gen: v5e
topology: v5e:2x2
jax: 0.10.0
libtpu: 0.0.40
codegen_flags: <defaults>
</compile_context>

<pallas_src>
import jax
import jax.numpy as jnp
from jax.experimental import pallas as pl
from jax.experimental.pallas import tpu as pltpu


def _round_up(n, m):
    return ((n + m - 1) // m) * m


def _bilstm_kernel(x_ref,      # (T*Bp, I)   time-major, batch padded
                   wih_ref,    # (I, 8H)     [Wih_f^T | Wih_b^T]
                   b_ref,      # (1, 8H)     [b_f | b_b]  (b_ih + b_hh)
                   whh_ref,    # (2H, 8H)    block-diag [Whh_f^T, 0; 0, Whh_b^T]
                   wemb_ref,   # (2H, Op)    embedding weight^T, lane-padded
                   bemb_ref,   # (1, Op)     embedding bias, lane-padded
                   out_ref,    # (T*Bp, Op)
                   gx,         # scratch (T*Bp, 8H) input-projected gates (fwd|bwd)
                   h_all,      # scratch (T*Bp, 2H) per-step hidden (fwd|bwd)
                   h_st,       # scratch (Bp, 2H)   [h_fwd | h_bwd]
                   c_st):      # scratch (Bp, 2H)   [c_fwd | c_bwd]
    H = whh_ref.shape[0] // 2
    G = 4 * H
    Bp = h_st.shape[0]
    T = x_ref.shape[0] // Bp

    # Fused input projection for both directions over the whole sequence:
    # one MXU pass, lane-dense (8H) output, bias added once.
    gx[...] = (jnp.dot(x_ref[...], wih_ref[...],
                       preferred_element_type=jnp.float32) + b_ref[...])

    # Zero initial states (PyTorch default).
    h_st[...] = jnp.zeros_like(h_st)
    c_st[...] = jnp.zeros_like(c_st)

    def lstm_cell(gates, c_prev):
        # PyTorch gate order along the 4H axis: [i, f, g, o].
        i_g = jax.nn.sigmoid(gates[:, 0:H])
        f_g = jax.nn.sigmoid(gates[:, H:2 * H])
        g_g = jnp.tanh(gates[:, 2 * H:3 * H])
        o_g = jax.nn.sigmoid(gates[:, 3 * H:4 * H])
        c_new = f_g * c_prev + i_g * g_g
        h_new = o_g * jnp.tanh(c_new)
        return h_new, c_new

    def step(t, carry):
        # Forward direction consumes timestep t, backward consumes T-1-t;
        # both are independent within an iteration -> overlap MXU/VPU/EUP.
        rf = pl.multiple_of(t * Bp, Bp)
        rb = pl.multiple_of((T - 1 - t) * Bp, Bp)

        # One recurrent matmul for both directions (block-diagonal W_hh).
        rec = jnp.dot(h_st[...], whh_ref[...],
                      preferred_element_type=jnp.float32)        # (Bp, 8H)

        gates_f = gx[pl.ds(rf, Bp), 0:G] + rec[:, 0:G]
        gates_b = gx[pl.ds(rb, Bp), G:2 * G] + rec[:, G:2 * G]

        h_f, c_f = lstm_cell(gates_f, c_st[:, 0:H])
        h_b, c_b = lstm_cell(gates_b, c_st[:, H:2 * H])

        h_st[:, 0:H] = h_f
        h_st[:, H:2 * H] = h_b
        c_st[:, 0:H] = c_f
        c_st[:, H:2 * H] = c_b

        # Per-timestep-aligned writes (PyTorch bidirectional semantics);
        # no concatenate needed later: fwd -> [:, :H], bwd -> [:, H:].
        h_all[pl.ds(rf, Bp), 0:H] = h_f
        h_all[pl.ds(rb, Bp), H:2 * H] = h_b
        return carry

    # Fully unroll short recurrences for LLO scheduling visibility.
    jax.lax.fori_loop(0, T, step, 0, unroll=bool(T <= 16))

    # Final projection over the whole sequence: one MXU pass, lane-dense Op.
    out_ref[...] = (jnp.dot(h_all[...], wemb_ref[...],
                            preferred_element_type=jnp.float32)
                    + bemb_ref[...])


def bidirectional_lstm(x, params):
    """x: (B, T, input_size) f32 -> (B, T, out_features) f32."""
    B, T, I = x.shape
    H = params["whh_f"].shape[1]
    O = params["wemb"].shape[0]
    G = 4 * H
    Bp = _round_up(B, 8)        # sublane-aligned batch
    Op = _round_up(O, 128)      # lane-dense output

    # Host-side layout plumbing (free relative to kernel cost):
    # pre-transpose & fuse weights so the kernel sees MXU-ready operands.
    wih_cat = jnp.concatenate([params["wih_f"].T, params["wih_b"].T], axis=1)  # (I, 8H)
    b_cat = jnp.concatenate([params["b_f"], params["b_b"]], axis=1)            # (1, 8H)
    zero_blk = jnp.zeros((H, G), jnp.float32)
    whh_bd = jnp.concatenate(
        [jnp.concatenate([params["whh_f"].T, zero_blk], axis=1),
         jnp.concatenate([zero_blk, params["whh_b"].T], axis=1)], axis=0)      # (2H, 8H)
    wemb_t = jnp.zeros((2 * H, Op), jnp.float32).at[:, :O].set(params["wemb"].T)
    bemb_p = jnp.zeros((1, Op), jnp.float32).at[:, :O].set(params["bemb"])

    # Pad batch, flatten to 2D time-major (T*Bp, I): row = t*Bp + b.
    x_p = jnp.pad(x, ((0, Bp - B), (0, 0), (0, 0)))
    x_tm = jnp.transpose(x_p, (1, 0, 2)).reshape(T * Bp, I)

    vmem = pl.BlockSpec(memory_space=pltpu.MemorySpace.VMEM)
    out_flat = pl.pallas_call(
        _bilstm_kernel,
        out_shape=jax.ShapeDtypeStruct((T * Bp, Op), jnp.float32),
        in_specs=[vmem] * 6,
        out_specs=vmem,
        scratch_shapes=[
            pltpu.VMEM((T * Bp, 8 * H), jnp.float32),   # gx  (fused fwd|bwd)
            pltpu.VMEM((T * Bp, 2 * H), jnp.float32),   # h_all (fwd|bwd halves)
            pltpu.VMEM((Bp, 2 * H), jnp.float32),       # h state
            pltpu.VMEM((Bp, 2 * H), jnp.float32),       # c state
        ],
    )(x_tm, wih_cat, b_cat, whh_bd, wemb_t, bemb_p)

    out = out_flat.reshape(T, Bp, Op)[:, :B, :O]        # drop batch/lane padding
    return jnp.transpose(out, (1, 0, 2))                # back to (B, T, O)


def init_params(key, input_size, hidden_size, out_features):
    """Deterministic init mirroring nn.LSTM / nn.Linear parameter shapes."""
    H, I, O = hidden_size, input_size, out_features
    k_lstm = 1.0 / jnp.sqrt(jnp.float32(H))
    k_lin = 1.0 / jnp.sqrt(jnp.float32(2 * H))
    ks = jax.random.split(key, 10)

    def u(k, shape, bound):
        return jax.random.uniform(k, shape, jnp.float32, -bound, bound)

    # Gate order matches PyTorch: [i, f, g, o] stacked along the 4H axis.
    wih_f = u(ks[0], (4 * H, I), k_lstm)
    whh_f = u(ks[1], (4 * H, H), k_lstm)
    b_f = (u(ks[2], (4 * H,), k_lstm) + u(ks[3], (4 * H,), k_lstm)).reshape(1, 4 * H)
    wih_b = u(ks[4], (4 * H, I), k_lstm)
    whh_b = u(ks[5], (4 * H, H), k_lstm)
    b_b = (u(ks[6], (4 * H,), k_lstm) + u(ks[7], (4 * H,), k_lstm)).reshape(1, 4 * H)
    wemb = u(ks[8], (O, 2 * H), k_lin)
    bemb = u(ks[9], (O,), k_lin).reshape(1, O)
    return dict(wih_f=wih_f, whh_f=whh_f, b_f=b_f,
                wih_b=wih_b, whh_b=whh_b, b_b=b_b,
                wemb=wemb, bemb=bemb)


if __name__ == "__main__":
    B, T = 2, 8
    input_size, hidden_size, out_features = 16, 32, 8

    key = jax.random.PRNGKey(0)
    k_x, k_p = jax.random.split(key)
    x = jax.random.normal(k_x, (B, T, input_size), jnp.float32)
    params = init_params(k_p, input_size, hidden_size, out_features)

    out = jax.block_until_ready(jax.jit(bidirectional_lstm)(x, params))
    assert out.shape == (B, T, out_features), out.shape
    assert bool(jnp.all(jnp.isfinite(out)))
    print("KERNEL_OK")
</pallas_src>

<mosaic_0001>
module attributes {stable_mosaic.version = 11 : i64} {
  func.func @_bilstm_kernel(%arg0: memref<64x16xf32, #tpu.memory_space<vmem>>, %arg1: memref<16x256xf32, #tpu.memory_space<vmem>>, %arg2: memref<1x256xf32, #tpu.memory_space<vmem>>, %arg3: memref<64x256xf32, #tpu.memory_space<vmem>>, %arg4: memref<64x128xf32, #tpu.memory_space<vmem>>, %arg5: memref<1x128xf32, #tpu.memory_space<vmem>>, %arg6: memref<64x128xf32, #tpu.memory_space<vmem>>, %arg7: memref<64x256xf32, #tpu.memory_space<vmem>>, %arg8: memref<64x64xf32, #tpu.memory_space<vmem>>, %arg9: memref<8x64xf32, #tpu.memory_space<vmem>>, %arg10: memref<8x64xf32, #tpu.memory_space<vmem>>) attributes {dimension_semantics = [], scalar_prefetch = 0 : i64, scratch_operands = 4 : i64, tpu.core_type = #tpu.core_type<tc>} {
    %c0 = arith.constant 0 : index
    %c0_0 = arith.constant 0 : index
    %0 = vector.load %arg0[%c0, %c0_0] : memref<64x16xf32, #tpu.memory_space<vmem>>, vector<64x16xf32>
    %c0_1 = arith.constant 0 : index
    %c0_2 = arith.constant 0 : index
    %1 = vector.load %arg1[%c0_1, %c0_2] : memref<16x256xf32, #tpu.memory_space<vmem>>, vector<16x256xf32>
    %cst = arith.constant dense<0.000000e+00> : vector<64x256xf32>
    %2 = tpu.matmul %0, %1, %cst {dimension_numbers = #tpu.dot_dimension_numbers<[1], [0], [0], [1], [0, 0, 1, 1], [], []>} : vector<64x16xf32>, vector<16x256xf32>, vector<64x256xf32> -> vector<64x256xf32>
    %c0_3 = arith.constant 0 : index
    %c0_4 = arith.constant 0 : index
    %3 = vector.load %arg2[%c0_3, %c0_4] : memref<1x256xf32, #tpu.memory_space<vmem>>, vector<1x256xf32>
    %4 = vector.broadcast %3 : vector<1x256xf32> to vector<64x256xf32>
    %5 = arith.addf %2, %4 : vector<64x256xf32>
    %c0_5 = arith.constant 0 : index
    %c0_6 = arith.constant 0 : index
    %6 = vector.load %arg7[%c0_5, %c0_6] : memref<64x256xf32, #tpu.memory_space<vmem>>, vector<64x256xf32>
    tpu.vector_store %arg7[%c0_5, %c0_6], %5 {strides = array<i32>} : memref<64x256xf32, #tpu.memory_space<vmem>>, vector<64x256xf32>,
    %cst_7 = arith.constant 0.000000e+00 : f32
    %7 = vector.broadcast %cst_7 : f32 to vector<8x64xf32>
    %c0_8 = arith.constant 0 : index
    %c0_9 = arith.constant 0 : index
    %8 = vector.load %arg9[%c0_8, %c0_9] : memref<8x64xf32, #tpu.memory_space<vmem>>, vector<8x64xf32>
    tpu.vector_store %arg9[%c0_8, %c0_9], %7 {strides = array<i32>} : memref<8x64xf32, #tpu.memory_space<vmem>>, vector<8x64xf32>,
    %cst_10 = arith.constant 0.000000e+00 : f32
    %9 = vector.broadcast %cst_10 : f32 to vector<8x64xf32>
    %c0_11 = arith.constant 0 : index
    %c0_12 = arith.constant 0 : index
    %10 = vector.load %arg10[%c0_11, %c0_12] : memref<8x64xf32, #tpu.memory_space<vmem>>, vector<8x64xf32>
    tpu.vector_store %arg10[%c0_11, %c0_12], %9 {strides = array<i32>} : memref<8x64xf32, #tpu.memory_space<vmem>>, vector<8x64xf32>,
    %c0_i32 = arith.constant 0 : i32
    %c8_i32 = arith.constant 8 : i32
    %11 = arith.muli %c0_i32, %c8_i32 : i32
    %12 = tpu.assume_multiple %11, 8 : i32
    %c7_i32 = arith.constant 7 : i32
    %13 = arith.subi %c7_i32, %c0_i32 : i32
    %c8_i32_13 = arith.constant 8 : i32
    %14 = arith.muli %13, %c8_i32_13 : i32
    %15 = tpu.assume_multiple %14, 8 : i32
    %c0_14 = arith.constant 0 : index
    %c0_15 = arith.constant 0 : index
    %16 = vector.load %arg9[%c0_14, %c0_15] : memref<8x64xf32, #tpu.memory_space<vmem>>, vector<8x64xf32>
    %c0_16 = arith.constant 0 : index
    %c0_17 = arith.constant 0 : index
    %17 = vector.load %arg3[%c0_16, %c0_17] : memref<64x256xf32, #tpu.memory_space<vmem>>, vector<64x256xf32>
    %cst_18 = arith.constant dense<0.000000e+00> : vector<8x256xf32>
    %18 = tpu.matmul %16, %17, %cst_18 {dimension_numbers = #tpu.dot_dimension_numbers<[1], [0], [0], [1], [0, 0, 1, 1], [], []>} : vector<8x64xf32>, vector<64x256xf32>, vector<8x256xf32> -> vector<8x256xf32>
    %19 = arith.index_cast %12 : i32 to index
    %c0_19 = arith.constant 0 : index
    %20 = vector.load %arg7[%19, %c0_19] : memref<64x256xf32, #tpu.memory_space<vmem>>, vector<8x128xf32>
    %21 = vector.extract_strided_slice %18 {offsets = [0, 0], sizes = [8, 128], strides = [1, 1]} : vector<8x256xf32> to vector<8x128xf32>
    %22 = arith.addf %20, %21 : vector<8x128xf32>
    %23 = arith.index_cast %15 : i32 to index
    %c128 = arith.constant 128 : index
    %24 = vector.load %arg7[%23, %c128] : memref<64x256xf32, #tpu.memory_space<vmem>>, vector<8x128xf32>
    %25 = vector.extract_strided_slice %18 {offsets = [0, 128], sizes = [8, 128], strides = [1, 1]} : vector<8x256xf32> to vector<8x128xf32>
    %26 = arith.addf %24, %25 : vector<8x128xf32>
    %c0_20 = arith.constant 0 : index
    %c0_21 = arith.constant 0 : index
    %27 = vector.load %arg10[%c0_20, %c0_21] : memref<8x64xf32, #tpu.memory_space<vmem>>, vector<8x32xf32>
    %28 = vector.extract_strided_slice %22 {offsets = [0, 0], sizes = [8, 32], strides = [1, 1]} : vector<8x128xf32> to vector<8x32xf32>
    %29 = arith.negf %28 : vector<8x32xf32>
    %30 = math.exp %29 : vector<8x32xf32>
    %cst_22 = arith.constant 1.000000e+00 : f32
    %31 = vector.broadcast %cst_22 : f32 to vector<8x32xf32>
    %32 = arith.addf %31, %30 : vector<8x32xf32>
    %33 = arith.divf %31, %32 : vector<8x32xf32>
    %34 = vector.extract_strided_slice %22 {offsets = [0, 32], sizes = [8, 32], strides = [1, 1]} : vector<8x128xf32> to vector<8x32xf32>
    %35 = arith.negf %34 : vector<8x32xf32>
    %36 = math.exp %35 : vector<8x32xf32>
    %cst_23 = arith.constant 1.000000e+00 : f32
    %37 = vector.broadcast %cst_23 : f32 to vector<8x32xf32>
    %38 = arith.addf %37, %36 : vector<8x32xf32>
    %39 = arith.divf %37, %38 : vector<8x32xf32>
    %40 = vector.extract_strided_slice %22 {offsets = [0, 64], sizes = [8, 32], strides = [1, 1]} : vector<8x128xf32> to vector<8x32xf32>
    %41 = math.tanh %40 : vector<8x32xf32>
    %42 = vector.extract_strided_slice %22 {offsets = [0, 96], sizes = [8, 32], strides = [1, 1]} : vector<8x128xf32> to vector<8x32xf32>
    %43 = arith.negf %42 : vector<8x32xf32>
    %44 = math.exp %43 : vector<8x32xf32>
    %cst_24 = arith.constant 1.000000e+00 : f32
    %45 = vector.broadcast %cst_24 : f32 to vector<8x32xf32>
    %46 = arith.addf %45, %44 : vector<8x32xf32>
    %47 = arith.divf %45, %46 : vector<8x32xf32>
    %48 = arith.mulf %39, %27 : vector<8x32xf32>
    %49 = arith.mulf %33, %41 : vector<8x32xf32>
    %50 = arith.addf %48, %49 : vector<8x32xf32>
    %51 = math.tanh %50 : vector<8x32xf32>
    %52 = arith.mulf %47, %51 : vector<8x32xf32>
    %c0_25 = arith.constant 0 : index
    %c32 = arith.constant 32 : index
    %53 = vector.load %arg10[%c0_25, %c32] : memref<8x64xf32, #tpu.memory_space<vmem>>, vector<8x32xf32>
    %54 = vector.extract_strided_slice %26 {offsets = [0, 0], sizes = [8, 32], strides = [1, 1]} : vector<8x128xf32> to vector<8x32xf32>
    %55 = arith.negf %54 : vector<8x32xf32>
    %56 = math.exp %55 : vector<8x32xf32>
    %cst_26 = arith.constant 1.000000e+00 : f32
    %57 = vector.broadcast %cst_26 : f32 to vector<8x32xf32>
    %58 = arith.addf %57, %56 : vector<8x32xf32>
    %59 = arith.divf %57, %58 : vector<8x32xf32>
    %60 = vector.extract_strided_slice %26 {offsets = [0, 32], sizes = [8, 32], strides = [1, 1]} : vector<8x128xf32> to vector<8x32xf32>
    %61 = arith.negf %60 : vector<8x32xf32>
    %62 = math.exp %61 : vector<8x32xf32>
    %cst_27 = arith.constant 1.000000e+00 : f32
    %63 = vector.broadcast %cst_27 : f32 to vector<8x32xf32>
    %64 = arith.addf %63, %62 : vector<8x32xf32>
    %65 = arith.divf %63, %64 : vector<8x32xf32>
    %66 = vector.extract_strided_slice %26 {offsets = [0, 64], sizes = [8, 32], strides = [1, 1]} : vector<8x128xf32> to vector<8x32xf32>
    %67 = math.tanh %66 : vector<8x32xf32>
    %68 = vector.extract_strided_slice %26 {offsets = [0, 96], sizes = [8, 32], strides = [1, 1]} : vector<8x128xf32> to vector<8x32xf32>
    %69 = arith.negf %68 : vector<8x32xf32>
    %70 = math.exp %69 : vector<8x32xf32>
    %cst_28 = arith.constant 1.000000e+00 : f32
    %71 = vector.broadcast %cst_28 : f32 to vector<8x32xf32>
    %72 = arith.addf %71, %70 : vector<8x32xf32>
    %73 = arith.divf %71, %72 : vector<8x32xf32>
    %74 = arith.mulf %65, %53 : vector<8x32xf32>
    %75 = arith.mulf %59, %67 : vector<8x32xf32>
    %76 = arith.addf %74, %75 : vector<8x32xf32>
    %77 = math.tanh %76 : vector<8x32xf32>
    %78 = arith.mulf %73, %77 : vector<8x32xf32>
    %c0_29 = arith.constant 0 : index
    %c0_30 = arith.constant 0 : index
    %79 = vector.load %arg9[%c0_29, %c0_30] : memref<8x64xf32, #tpu.memory_space<vmem>>, vector<8x32xf32>
    tpu.vector_store %arg9[%c0_29, %c0_30], %52 {strides = array<i32>} : memref<8x64xf32, #tpu.memory_space<vmem>>, vector<8x32xf32>,
    %c0_31 = arith.constant 0 : index
    %c32_32 = arith.constant 32 : index
    %80 = vector.load %arg9[%c0_31, %c32_32] : memref<8x64xf32, #tpu.memory_space<vmem>>, vector<8x32xf32>
    tpu.vector_store %arg9[%c0_31, %c32_32], %78 {strides = array<i32>} : memref<8x64xf32, #tpu.memory_space<vmem>>, vector<8x32xf32>,
    %c0_33 = arith.constant 0 : index
    %c0_34 = arith.constant 0 : index
    %81 = vector.load %arg10[%c0_33, %c0_34] : memref<8x64xf32, #tpu.memory_space<vmem>>, vector<8x32xf32>
    tpu.vector_store %arg10[%c0_33, %c0_34], %50 {strides = array<i32>} : memref<8x64xf32, #tpu.memory_space<vmem>>, vector<8x32xf32>,
    %c0_35 = arith.constant 0 : index
    %c32_36 = arith.constant 32 : index
    %82 = vector.load %arg10[%c0_35, %c32_36] : memref<8x64xf32, #tpu.memory_space<vmem>>, vector<8x32xf32>
    tpu.vector_store %arg10[%c0_35, %c32_36], %76 {strides = array<i32>} : memref<8x64xf32, #tpu.memory_space<vmem>>, vector<8x32xf32>,
    %83 = arith.index_cast %12 : i32 to index
    %c0_37 = arith.constant 0 : index
    %84 = vector.load %arg8[%83, %c0_37] : memref<64x64xf32, #tpu.memory_space<vmem>>, vector<8x32xf32>
    tpu.vector_store %arg8[%83, %c0_37], %52 {strides = array<i32>} : memref<64x64xf32, #tpu.memory_space<vmem>>, vector<8x32xf32>,
    %85 = arith.index_cast %15 : i32 to index
    %c32_38 = arith.constant 32 : index
    %86 = vector.load %arg8[%85, %c32_38] : memref<64x64xf32, #tpu.memory_space<vmem>>, vector<8x32xf32>
    tpu.vector_store %arg8[%85, %c32_38], %78 {strides = array<i32>} : memref<64x64xf32, #tpu.memory_space<vmem>>, vector<8x32xf32>,
    %c1_i32 = arith.constant 1 : i32
    %c8_i32_39 = arith.constant 8 : i32
    %87 = arith.muli %c1_i32, %c8_i32_39 : i32
    %88 = tpu.assume_multiple %87, 8 : i32
    %c7_i32_40 = arith.constant 7 : i32
    %89 = arith.subi %c7_i32_40, %c1_i32 : i32
    %c8_i32_41 = arith.constant 8 : i32
    %90 = arith.muli %89, %c8_i32_41 : i32
    %91 = tpu.assume_multiple %90, 8 : i32
    %c0_42 = arith.constant 0 : index
    %c0_43 = arith.constant 0 : index
    %92 = vector.load %arg9[%c0_42, %c0_43] : memref<8x64xf32, #tpu.memory_space<vmem>>, vector<8x64xf32>
    %c0_44 = arith.constant 0 : index
    %c0_45 = arith.constant 0 : index
    %93 = vector.load %arg3[%c0_44, %c0_45] : memref<64x256xf32, #tpu.memory_space<vmem>>, vector<64x256xf32>
    %cst_46 = arith.constant dense<0.000000e+00> : vector<8x256xf32>
    %94 = tpu.matmul %92, %93, %cst_46 {dimension_numbers = #tpu.dot_dimension_numbers<[1], [0], [0], [1], [0, 0, 1, 1], [], []>} : vector<8x64xf32>, vector<64x256xf32>, vector<8x256xf32> -> vector<8x256xf32>
    %95 = arith.index_cast %88 : i32 to index
    %c0_47 = arith.constant 0 : index
    %96 = vector.load %arg7[%95, %c0_47] : memref<64x256xf32, #tpu.memory_space<vmem>>, vector<8x128xf32>
    %97 = vector.extract_strided_slice %94 {offsets = [0, 0], sizes = [8, 128], strides = [1, 1]} : vector<8x256xf32> to vector<8x128xf32>
    %98 = arith.addf %96, %97 : vector<8x128xf32>
    %99 = arith.index_cast %91 : i32 to index
    %c128_48 = arith.constant 128 : index
    %100 = vector.load %arg7[%99, %c128_48] : memref<64x256xf32, #tpu.memory_space<vmem>>, vector<8x128xf32>
    %101 = vector.extract_strided_slice %94 {offsets = [0, 128], sizes = [8, 128], strides = [1, 1]} : vector<8x256xf32> to vector<8x128xf32>
    %102 = arith.addf %100, %101 : vector<8x128xf32>
    %c0_49 = arith.constant 0 : index
    %c0_50 = arith.constant 0 : index
    %103 = vector.load %arg10[%c0_49, %c0_50] : memref<8x64xf32, #tpu.memory_space<vmem>>, vector<8x32xf32>
    %104 = vector.extract_strided_slice %98 {offsets = [0, 0], sizes = [8, 32], strides = [1, 1]} : vector<8x128xf32> to vector<8x32xf32>
    %105 = arith.negf %104 : vector<8x32xf32>
    %106 = math.exp %105 : vector<8x32xf32>
    %cst_51 = arith.constant 1.000000e+00 : f32
    %107 = vector.broadcast %cst_51 : f32 to vector<8x32xf32>
    %108 = arith.addf %107, %106 : vector<8x32xf32>
    %109 = arith.divf %107, %108 : vector<8x32xf32>
    %110 = vector.extract_strided_slice %98 {offsets = [0, 32], sizes = [8, 32], strides = [1, 1]} : vector<8x128xf32> to vector<8x32xf32>
    %111 = arith.negf %110 : vector<8x32xf32>
    %112 = math.exp %111 : vector<8x32xf32>
    %cst_52 = arith.constant 1.000000e+00 : f32
    %113 = vector.broadcast %cst_52 : f32 to vector<8x32xf32>
    %114 = arith.addf %113, %112 : vector<8x32xf32>
    %115 = arith.divf %113, %114 : vector<8x32xf32>
    %116 = vector.extract_strided_slice %98 {offsets = [0, 64], sizes = [8, 32], strides = [1, 1]} : vector<8x128xf32> to vector<8x32xf32>
    %117 = math.tanh %116 : vector<8x32xf32>
    %118 = vector.extract_strided_slice %98 {offsets = [0, 96], sizes = [8, 32], strides = [1, 1]} : vector<8x128xf32> to vector<8x32xf32>
    %119 = arith.negf %118 : vector<8x32xf32>
    %120 = math.exp %119 : vector<8x32xf32>
    %cst_53 = arith.constant 1.000000e+00 : f32
    %121 = vector.broadcast %cst_53 : f32 to vector<8x32xf32>
    %122 = arith.addf %121, %120 : vector<8x32xf32>
    %123 = arith.divf %121, %122 : vector<8x32xf32>
    %124 = arith.mulf %115, %103 : vector<8x32xf32>
    %125 = arith.mulf %109, %117 : vector<8x32xf32>
    %126 = arith.addf %124, %125 : vector<8x32xf32>
    %127 = math.tanh %126 : vector<8x32xf32>
    %128 = arith.mulf %123, %127 : vector<8x32xf32>
    %c0_54 = arith.constant 0 : index
    %c32_55 = arith.constant 32 : index
    %129 = vector.load %arg10[%c0_54, %c32_55] : memref<8x64xf32, #tpu.memory_space<vmem>>, vector<8x32xf32>
    %130 = vector.extract_strided_slice %102 {offsets = [0, 0], sizes = [8, 32], strides = [1, 1]} : vector<8x128xf32> to vector<8x32xf32>
    %131 = arith.negf %130 : vector<8x32xf32>
    %132 = math.exp %131 : vector<8x32xf32>
    %cst_56 = arith.constant 1.000000e+00 : f32
    %133 = vector.broadcast %cst_56 : f32 to vector<8x32xf32>
    %134 = arith.addf %133, %132 : vector<8x32xf32>
    %135 = arith.divf %133, %134 : vector<8x32xf32>
    %136 = vector.extract_strided_slice %102 {offsets = [0, 32], sizes = [8, 32], strides = [1, 1]} : vector<8x128xf32> to vector<8x32xf32>
    %137 = arith.negf %136 : vector<8x32xf32>
    %138 = math.exp %137 : vector<8x32xf32>
    %cst_57 = arith.constant 1.000000e+00 : f32
    %139 = vector.broadcast %cst_57 : f32 to vector<8x32xf32>
    %140 = arith.addf %139, %138 : vector<8x32xf32>
    %141 = arith.divf %139, %140 : vector<8x32xf32>
    %142 = vector.extract_strided_slice %102 {offsets = [0, 64], sizes = [8, 32], strides = [1, 1]} : vector<8x128xf32> to vector<8x32xf32>
    %143 = math.tanh %142 : vector<8x32xf32>
    %144 = vector.extract_strided_slice %102 {offsets = [0, 96], sizes = [8, 32], strides = [1, 1]} : vector<8x128xf32> to vector<8x32xf32>
    %145 = arith.negf %144 : vector<8x32xf32>
    %146 = math.exp %145 : vector<8x32xf32>
    %cst_58 = arith.constant 1.000000e+00 : f32
    %147 = vector.broadcast %cst_58 : f32 to vector<8x32xf32>
    %148 = arith.addf %147, %146 : vector<8x32xf32>
    %149 = arith.divf %147, %148 : vector<8x32xf32>
    %150 = arith.mulf %141, %129 : vector<8x32xf32>
    %151 = arith.mulf %135, %143 : vector<8x32xf32>
    %152 = arith.addf %150, %151 : vector<8x32xf32>
    %153 = math.tanh %152 : vector<8x32xf32>
    %154 = arith.mulf %149, %153 : vector<8x32xf32>
    %c0_59 = arith.constant 0 : index
    %c0_60 = arith.constant 0 : index
    %155 = vector.load %arg9[%c0_59, %c0_60] : memref<8x64xf32, #tpu.memory_space<vmem>>, vector<8x32xf32>
    tpu.vector_store %arg9[%c0_59, %c0_60], %128 {strides = array<i32>} : memref<8x64xf32, #tpu.memory_space<vmem>>, vector<8x32xf32>,
    %c0_61 = arith.constant 0 : index
    %c32_62 = arith.constant 32 : index
    %156 = vector.load %arg9[%c0_61, %c32_62] : memref<8x64xf32, #tpu.memory_space<vmem>>, vector<8x32xf32>
    tpu.vector_store %arg9[%c0_61, %c32_62], %154 {strides = array<i32>} : memref<8x64xf32, #tpu.memory_space<vmem>>, vector<8x32xf32>,
    %c0_63 = arith.constant 0 : index
    %c0_64 = arith.constant 0 : index
    %157 = vector.load %arg10[%c0_63, %c0_64] : memref<8x64xf32, #tpu.memory_space<vmem>>, vector<8x32xf32>
    tpu.vector_store %arg10[%c0_63, %c0_64], %126 {strides = array<i32>} : memref<8x64xf32, #tpu.memory_space<vmem>>, vector<8x32xf32>,
    %c0_65 = arith.constant 0 : index
    %c32_66 = arith.constant 32 : index
    %158 = vector.load %arg10[%c0_65, %c32_66] : memref<8x64xf32, #tpu.memory_space<vmem>>, vector<8x32xf32>
    tpu.vector_store %arg10[%c0_65, %c32_66], %152 {strides = array<i32>} : memref<8x64xf32, #tpu.memory_space<vmem>>, vector<8x32xf32>,
    %159 = arith.index_cast %88 : i32 to index
    %c0_67 = arith.constant 0 : index
    %160 = vector.load %arg8[%159, %c0_67] : memref<64x64xf32, #tpu.memory_space<vmem>>, vector<8x32xf32>
    tpu.vector_store %arg8[%159, %c0_67], %128 {strides = array<i32>} : memref<64x64xf32, #tpu.memory_space<vmem>>, vector<8x32xf32>,
    %161 = arith.index_cast %91 : i32 to index
    %c32_68 = arith.constant 32 : index
    %162 = vector.load %arg8[%161, %c32_68] : memref<64x64xf32, #tpu.memory_space<vmem>>, vector<8x32xf32>
    tpu.vector_store %arg8[%161, %c32_68], %154 {strides = array<i32>} : memref<64x64xf32, #tpu.memory_space<vmem>>, vector<8x32xf32>,
    %c2_i32 = arith.constant 2 : i32
    %c8_i32_69 = arith.constant 8 : i32
    %163 = arith.muli %c2_i32, %c8_i32_69 : i32
    %164 = tpu.assume_multiple %163, 8 : i32
    %c7_i32_70 = arith.constant 7 : i32
    %165 = arith.subi %c7_i32_70, %c2_i32 : i32
    %c8_i32_71 = arith.constant 8 : i32
    %166 = arith.muli %165, %c8_i32_71 : i32
    %167 = tpu.assume_multiple %166, 8 : i32
    %c0_72 = arith.constant 0 : index
    %c0_73 = arith.constant 0 : index
    %168 = vector.load %arg9[%c0_72, %c0_73] : memref<8x64xf32, #tpu.memory_space<vmem>>, vector<8x64xf32>
    %c0_74 = arith.constant 0 : index
    %c0_75 = arith.constant 0 : index
    %169 = vector.load %arg3[%c0_74, %c0_75] : memref<64x256xf32, #tpu.memory_space<vmem>>, vector<64x256xf32>
    %cst_76 = arith.constant dense<0.000000e+00> : vector<8x256xf32>
    %170 = tpu.matmul %168, %169, %cst_76 {dimension_numbers = #tpu.dot_dimension_numbers<[1], [0], [0], [1], [0, 0, 1, 1], [], []>} : vector<8x64xf32>, vector<64x256xf32>, vector<8x256xf32> -> vector<8x256xf32>
    %171 = arith.index_cast %164 : i32 to index
    %c0_77 = arith.constant 0 : index
    %172 = vector.load %arg7[%171, %c0_77] : memref<64x256xf32, #tpu.memory_space<vmem>>, vector<8x128xf32>
    %173 = vector.extract_strided_slice %170 {offsets = [0, 0], sizes = [8, 128], strides = [1, 1]} : vector<8x256xf32> to vector<8x128xf32>
    %174 = arith.addf %172, %173 : vector<8x128xf32>
    %175 = arith.index_cast %167 : i32 to index
    %c128_78 = arith.constant 128 : index
    %176 = vector.load %arg7[%175, %c128_78] : memref<64x256xf32, #tpu.memory_space<vmem>>, vector<8x128xf32>
    %177 = vector.extract_strided_slice %170 {offsets = [0, 128], sizes = [8, 128], strides = [1, 1]} : vector<8x256xf32> to vector<8x128xf32>
    %178 = arith.addf %176, %177 : vector<8x128xf32>
    %c0_79 = arith.constant 0 : index
    %c0_80 = arith.constant 0 : index
    %179 = vector.load %arg10[%c0_79, %c0_80] : memref<8x64xf32, #tpu.memory_space<vmem>>, vector<8x32xf32>
    %180 = vector.extract_strided_slice %174 {offsets = [0, 0], sizes = [8, 32], strides = [1, 1]} : vector<8x128xf32> to vector<8x32xf32>
    %181 = arith.negf %180 : vector<8x32xf32>
    %182 = math.exp %181 : vector<8x32xf32>
    %cst_81 = arith.constant 1.000000e+00 : f32
    %183 = vector.broadcast %cst_81 : f32 to vector<8x32xf32>
    %184 = arith.addf %183, %182 : vector<8x32xf32>
    %185 = arith.divf %183, %184 : vector<8x32xf32>
    %186 = vector.extract_strided_slice %174 {offsets = [0, 32], sizes = [8, 32], strides = [1, 1]} : vector<8x128xf32> to vector<8x32xf32>
    %187 = arith.negf %186 : vector<8x32xf32>
    %188 = math.exp %187 : vector<8x32xf32>
    %cst_82 = arith.constant 1.000000e+00 : f32
    %189 = vector.broadcast %cst_82 : f32 to vector<8x32xf32>
    %190 = arith.addf %189, %188 : vector<8x32xf32>
    %191 = arith.divf %189, %190 : vector<8x32xf32>
    %192 = vector.extract_strided_slice %174 {offsets = [0, 64], sizes = [8, 32], strides = [1, 1]} : vector<8x128xf32> to vector<8x32xf32>
    %193 = math.tanh %192 : vector<8x32xf32>
    %194 = vector.extract_strided_slice %174 {offsets = [0, 96], sizes = [8, 32], strides = [1, 1]} : vector<8x128xf32> to vector<8x32xf32>
    %195 = arith.negf %194 : vector<8x32xf32>
    %196 = math.exp %195 : vector<8x32xf32>
    %cst_83 = arith.constant 1.000000e+00 : f32
    %197 = vector.broadcast %cst_83 : f32 to vector<8x32xf32>
    %198 = arith.addf %197, %196 : vector<8x32xf32>
    %199 = arith.divf %197, %198 : vector<8x32xf32>
    %200 = arith.mulf %191, %179 : vector<8x32xf32>
    %201 = arith.mulf %185, %193 : vector<8x32xf32>
    %202 = arith.addf %200, %201 : vector<8x32xf32>
    %203 = math.tanh %202 : vector<8x32xf32>
    %204 = arith.mulf %199, %203 : vector<8x32xf32>
    %c0_84 = arith.constant 0 : index
    %c32_85 = arith.constant 32 : index
    %205 = vector.load %arg10[%c0_84, %c32_85] : memref<8x64xf32, #tpu.memory_space<vmem>>, vector<8x32xf32>
    %206 = vector.extract_strided_slice %178 {offsets = [0, 0], sizes = [8, 32], strides = [1, 1]} : vector<8x128xf32> to vector<8x32xf32>
    %207 = arith.negf %206 : vector<8x32xf32>
    %208 = math.exp %207 : vector<8x32xf32>
    %cst_86 = arith.constant 1.000000e+00 : f32
    %209 = vector.broadcast %cst_86 : f32 to vector<8x32xf32>
    %210 = arith.addf %209, %208 : vector<8x32xf32>
    %211 = arith.divf %209, %210 : vector<8x32xf32>
    %212 = vector.extract_strided_slice %178 {offsets = [0, 32], sizes = [8, 32], strides = [1, 1]} : vector<8x128xf32> to vector<8x32xf32>
    %213 = arith.negf %212 : vector<8x32xf32>
    %214 = math.exp %213 : vector<8x32xf32>
    %cst_87 = arith.constant 1.000000e+00 : f32
    %215 = vector.broadcast %cst_87 : f32 to vector<8x32xf32>
    %216 = arith.addf %215, %214 : vector<8x32xf32>
    %217 = arith.divf %215, %216 : vector<8x32xf32>
    %218 = vector.extract_strided_slice %178 {offsets = [0, 64], sizes = [8, 32], strides = [1, 1]} : vector<8x128xf32> to vector<8x32xf32>
    %219 = math.tanh %218 : vector<8x32xf32>
    %220 = vector.extract_strided_slice %178 {offsets = [0, 96], sizes = [8, 32], strides = [1, 1]} : vector<8x128xf32> to vector<8x32xf32>
    %221 = arith.negf %220 : vector<8x32xf32>
    %222 = math.exp %221 : vector<8x32xf32>
    %cst_88 = arith.constant 1.000000e+00 : f32
    %223 = vector.broadcast %cst_88 : f32 to vector<8x32xf32>
    %224 = arith.addf %223, %222 : vector<8x32xf32>
    %225 = arith.divf %223, %224 : vector<8x32xf32>
    %226 = arith.mulf %217, %205 : vector<8x32xf32>
    %227 = arith.mulf %211, %219 : vector<8x32xf32>
    %228 = arith.addf %226, %227 : vector<8x32xf32>
    %229 = math.tanh %228 : vector<8x32xf32>
    %230 = arith.mulf %225, %229 : vector<8x32xf32>
    %c0_89 = arith.constant 0 : index
    %c0_90 = arith.constant 0 : index
    %231 = vector.load %arg9[%c0_89, %c0_90] : memref<8x64xf32, #tpu.memory_space<vmem>>, vector<8x32xf32>
    tpu.vector_store %arg9[%c0_89, %c0_90], %204 {strides = array<i32>} : memref<8x64xf32, #tpu.memory_space<vmem>>, vector<8x32xf32>,
    %c0_91 = arith.constant 0 : index
    %c32_92 = arith.constant 32 : index
    %232 = vector.load %arg9[%c0_91, %c32_92] : memref<8x64xf32, #tpu.memory_space<vmem>>, vector<8x32xf32>
    tpu.vector_store %arg9[%c0_91, %c32_92], %230 {strides = array<i32>} : memref<8x64xf32, #tpu.memory_space<vmem>>, vector<8x32xf32>,
    %c0_93 = arith.constant 0 : index
    %c0_94 = arith.constant 0 : index
    %233 = vector.load %arg10[%c0_93, %c0_94] : memref<8x64xf32, #tpu.memory_space<vmem>>, vector<8x32xf32>
    tpu.vector_store %arg10[%c0_93, %c0_94], %202 {strides = array<i32>} : memref<8x64xf32, #tpu.memory_space<vmem>>, vector<8x32xf32>,
    %c0_95 = arith.constant 0 : index
    %c32_96 = arith.constant 32 : index
    %234 = vector.load %arg10[%c0_95, %c32_96] : memref<8x64xf32, #tpu.memory_space<vmem>>, vector<8x32xf32>
    tpu.vector_store %arg10[%c0_95, %c32_96], %228 {strides = array<i32>} : memref<8x64xf32, #tpu.memory_space<vmem>>, vector<8x32xf32>,
    %235 = arith.index_cast %164 : i32 to index
    %c0_97 = arith.constant 0 : index
    %236 = vector.load %arg8[%235, %c0_97] : memref<64x64xf32, #tpu.memory_space<vmem>>, vector<8x32xf32>
    tpu.vector_store %arg8[%235, %c0_97], %204 {strides = array<i32>} : memref<64x64xf32, #tpu.memory_space<vmem>>, vector<8x32xf32>,
    %237 = arith.index_cast %167 : i32 to index
    %c32_98 = arith.constant 32 : index
    %238 = vector.load %arg8[%237, %c32_98] : memref<64x64xf32, #tpu.memory_space<vmem>>, vector<8x32xf32>
    tpu.vector_store %arg8[%237, %c32_98], %230 {strides = array<i32>} : memref<64x64xf32, #tpu.memory_space<vmem>>, vector<8x32xf32>,
    %c3_i32 = arith.constant 3 : i32
    %c8_i32_99 = arith.constant 8 : i32
    %239 = arith.muli %c3_i32, %c8_i32_99 : i32
    %240 = tpu.assume_multiple %239, 8 : i32
    %c7_i32_100 = arith.constant 7 : i32
    %241 = arith.subi %c7_i32_100, %c3_i32 : i32
    %c8_i32_101 = arith.constant 8 : i32
    %242 = arith.muli %241, %c8_i32_101 : i32
    %243 = tpu.assume_multiple %242, 8 : i32
    %c0_102 = arith.constant 0 : index
    %c0_103 = arith.constant 0 : index
    %244 = vector.load %arg9[%c0_102, %c0_103] : memref<8x64xf32, #tpu.memory_space<vmem>>, vector<8x64xf32>
    %c0_104 = arith.constant 0 : index
    %c0_105 = arith.constant 0 : index
    %245 = vector.load %arg3[%c0_104, %c0_105] : memref<64x256xf32, #tpu.memory_space<vmem>>, vector<64x256xf32>
    %cst_106 = arith.constant dense<0.000000e+00> : vector<8x256xf32>
    %246 = tpu.matmul %244, %245, %cst_106 {dimension_numbers = #tpu.dot_dimension_numbers<[1], [0], [0], [1], [0, 0, 1, 1], [], []>} : vector<8x64xf32>, vector<64x256xf32>, vector<8x256xf32> -> vector<8x256xf32>
    %247 = arith.index_cast %240 : i32 to index
    %c0_107 = arith.constant 0 : index
    %248 = vector.load %arg7[%247, %c0_107] : memref<64x256xf32, #tpu.memory_space<vmem>>, vector<8x128xf32>
    %249 = vector.extract_strided_slice %246 {offsets = [0, 0], sizes = [8, 128], strides = [1, 1]} : vector<8x256xf32> to vector<8x128xf32>
    %250 = arith.addf %248, %249 : vector<8x128xf32>
    %251 = arith.index_cast %243 : i32 to index
    %c128_108 = arith.constant 128 : index
    %252 = vector.load %arg7[%251, %c128_108] : memref<64x256xf32, #tpu.memory_space<vmem>>, vector<8x128xf32>
    %253 = vector.extract_strided_slice %246 {offsets = [0, 128], sizes = [8, 128], strides = [1, 1]} : vector<8x256xf32> to vector<8x128xf32>
    %254 = arith.addf %252, %253 : vector<8x128xf32>
    %c0_109 = arith.constant 0 : index
    %c0_110 = arith.constant 0 : index
    %255 = vector.load %arg10[%c0_109, %c0_110] : memref<8x64xf32, #tpu.memory_space<vmem>>, vector<8x32xf32>
    %256 = vector.extract_strided_slice %250 {offsets = [0, 0], sizes = [8, 32], strides = [1, 1]} : vector<8x128xf32> to vector<8x32xf32>
    %257 = arith.negf %256 : vector<8x32xf32>
    %258 = math.exp %257 : vector<8x32xf32>
    %cst_111 = arith.constant 1.000000e+00 : f32
    %259 = vector.broadcast %cst_111 : f32 to vector<8x32xf32>
    %260 = arith.addf %259, %258 : vector<8x32xf32>
    %261 = arith.divf %259, %260 : vector<8x32xf32>
    %262 = vector.extract_strided_slice %250 {offsets = [0, 32], sizes = [8, 32], strides = [1, 1]} : vector<8x128xf32> to vector<8x32xf32>
    %263 = arith.negf %262 : vector<8x32xf32>
    %264 = math.exp %263 : vector<8x32xf32>
    %cst_112 = arith.constant 1.000000e+00 : f32
    %265 = vector.broadcast %cst_112 : f32 to vector<8x32xf32>
    %266 = arith.addf %265, %264 : vector<8x32xf32>
    %267 = arith.divf %265, %266 : vector<8x32xf32>
    %268 = vector.extract_strided_slice %250 {offsets = [0, 64], sizes = [8, 32], strides = [1, 1]} : vector<8x128xf32> to vector<8x32xf32>
    %269 = math.tanh %268 : vector<8x32xf32>
    %270 = vector.extract_strided_slice %250 {offsets = [0, 96], sizes = [8, 32], strides = [1, 1]} : vector<8x128xf32> to vector<8x32xf32>
    %271 = arith.negf %270 : vector<8x32xf32>
    %272 = math.exp %271 : vector<8x32xf32>
    %cst_113 = arith.constant 1.000000e+00 : f32
    %273 = vector.broadcast %cst_113 : f32 to vector<8x32xf32>
    %274 = arith.addf %273, %272 : vector<8x32xf32>
    %275 = arith.divf %273, %274 : vector<8x32xf32>
    %276 = arith.mulf %267, %255 : vector<8x32xf32>
    %277 = arith.mulf %261, %269 : vector<8x32xf32>
    %278 = arith.addf %276, %277 : vector<8x32xf32>
    %279 = math.tanh %278 : vector<8x32xf32>
    %280 = arith.mulf %275, %279 : vector<8x32xf32>
    %c0_114 = arith.constant 0 : index
    %c32_115 = arith.constant 32 : index
    %281 = vector.load %arg10[%c0_114, %c32_115] : memref<8x64xf32, #tpu.memory_space<vmem>>, vector<8x32xf32>
    %282 = vector.extract_strided_slice %254 {offsets = [0, 0], sizes = [8, 32], strides = [1, 1]} : vector<8x128xf32> to vector<8x32xf32>
    %283 = arith.negf %282 : vector<8x32xf32>
    %284 = math.exp %283 : vector<8x32xf32>
    %cst_116 = arith.constant 1.000000e+00 : f32
    %285 = vector.broadcast %cst_116 : f32 to vector<8x32xf32>
    %286 = arith.addf %285, %284 : vector<8x32xf32>
    %287 = arith.divf %285, %286 : vector<8x32xf32>
    %288 = vector.extract_strided_slice %254 {offsets = [0, 32], sizes = [8, 32], strides = [1, 1]} : vector<8x128xf32> to vector<8x32xf32>
    %289 = arith.negf %288 : vector<8x32xf32>
    %290 = math.exp %289 : vector<8x32xf32>
    %cst_117 = arith.constant 1.000000e+00 : f32
    %291 = vector.broadcast %cst_117 : f32 to vector<8x32xf32>
    %292 = arith.addf %291, %290 : vector<8x32xf32>
    %293 = arith.divf %291, %292 : vector<8x32xf32>
    %294 = vector.extract_strided_slice %254 {offsets = [0, 64], sizes = [8, 32], strides = [1, 1]} : vector<8x128xf32> to vector<8x32xf32>
    %295 = math.tanh %294 : vector<8x32xf32>
    %296 = vector.extract_strided_slice %254 {offsets = [0, 96], sizes = [8, 32], strides = [1, 1]} : vector<8x128xf32> to vector<8x32xf32>
    %297 = arith.negf %296 : vector<8x32xf32>
    %298 = math.exp %297 : vector<8x32xf32>
    %cst_118 = arith.constant 1.000000e+00 : f32
    %299 = vector.broadcast %cst_118 : f32 to vector<8x32xf32>
    %300 = arith.addf %299, %298 : vector<8x32xf32>
    %301 = arith.divf %299, %300 : vector<8x32xf32>
    %302 = arith.mulf %293, %281 : vector<8x32xf32>
    %303 = arith.mulf %287, %295 : vector<8x32xf32>
    %304 = arith.addf %302, %303 : vector<8x32xf32>
    %305 = math.tanh %304 : vector<8x32xf32>
    %306 = arith.mulf %301, %305 : vector<8x32xf32>
    %c0_119 = arith.constant 0 : index
    %c0_120 = arith.constant 0 : index
    %307 = vector.load %arg9[%c0_119, %c0_120] : memref<8x64xf32, #tpu.memory_space<vmem>>, vector<8x32xf32>
    tpu.vector_store %arg9[%c0_119, %c0_120], %280 {strides = array<i32>} : memref<8x64xf32, #tpu.memory_space<vmem>>, vector<8x32xf32>,
    %c0_121 = arith.constant 0 : index
    %c32_122 = arith.constant 32 : index
    %308 = vector.load %arg9[%c0_121, %c32_122] : memref<8x64xf32, #tpu.memory_space<vmem>>, vector<8x32xf32>
    tpu.vector_store %arg9[%c0_121, %c32_122], %306 {strides = array<i32>} : memref<8x64xf32, #tpu.memory_space<vmem>>, vector<8x32xf32>,
    %c0_123 = arith.constant 0 : index
    %c0_124 = arith.constant 0 : index
    %309 = vector.load %arg10[%c0_123, %c0_124] : memref<8x64xf32, #tpu.memory_space<vmem>>, vector<8x32xf32>
    tpu.vector_store %arg10[%c0_123, %c0_124], %278 {strides = array<i32>} : memref<8x64xf32, #tpu.memory_space<vmem>>, vector<8x32xf32>,
    %c0_125 = arith.constant 0 : index
    %c32_126 = arith.constant 32 : index
    %310 = vector.load %arg10[%c0_125, %c32_126] : memref<8x64xf32, #tpu.memory_space<vmem>>, vector<8x32xf32>
    tpu.vector_store %arg10[%c0_125, %c32_126], %304 {strides = array<i32>} : memref<8x64xf32, #tpu.memory_space<vmem>>, vector<8x32xf32>,
    %311 = arith.index_cast %240 : i32 to index
    %c0_127 = arith.constant 0 : index
    %312 = vector.load %arg8[%311, %c0_127] : memref<64x64xf32, #tpu.memory_space<vmem>>, vector<8x32xf32>
    tpu.vector_store %arg8[%311, %c0_127], %280 {strides = array<i32>} : memref<64x64xf32, #tpu.memory_space<vmem>>, vector<8x32xf32>,
    %313 = arith.index_cast %243 : i32 to index
    %c32_128 = arith.constant 32 : index
    %314 = vector.load %arg8[%313, %c32_128] : memref<64x64xf32, #tpu.memory_space<vmem>>, vector<8x32xf32>
    tpu.vector_store %arg8[%313, %c32_128], %306 {strides = array<i32>} : memref<64x64xf32, #tpu.memory_space<vmem>>, vector<8x32xf32>,
    %c4_i32 = arith.constant 4 : i32
    %c8_i32_129 = arith.constant 8 : i32
    %315 = arith.muli %c4_i32, %c8_i32_129 : i32
    %316 = tpu.assume_multiple %315, 8 : i32
    %c7_i32_130 = arith.constant 7 : i32
    %317 = arith.subi %c7_i32_130, %c4_i32 : i32
    %c8_i32_131 = arith.constant 8 : i32
    %318 = arith.muli %317, %c8_i32_131 : i32
    %319 = tpu.assume_multiple %318, 8 : i32
    %c0_132 = arith.constant 0 : index
    %c0_133 = arith.constant 0 : index
    %320 = vector.load %arg9[%c0_132, %c0_133] : memref<8x64xf32, #tpu.memory_space<vmem>>, vector<8x64xf32>
    %c0_134 = arith.constant 0 : index
    %c0_135 = arith.constant 0 : index
    %321 = vector.load %arg3[%c0_134, %c0_135] : memref<64x256xf32, #tpu.memory_space<vmem>>, vector<64x256xf32>
    %cst_136 = arith.constant dense<0.000000e+00> : vector<8x256xf32>
    %322 = tpu.matmul %320, %321, %cst_136 {dimension_numbers = #tpu.dot_dimension_numbers<[1], [0], [0], [1], [0, 0, 1, 1], [], []>} : vector<8x64xf32>, vector<64x256xf32>, vector<8x256xf32> -> vector<8x256xf32>
    %323 = arith.index_cast %316 : i32 to index
    %c0_137 = arith.constant 0 : index
    %324 = vector.load %arg7[%323, %c0_137] : memref<64x256xf32, #tpu.memory_space<vmem>>, vector<8x128xf32>
    %325 = vector.extract_strided_slice %322 {offsets = [0, 0], sizes = [8, 128], strides = [1, 1]} : vector<8x256xf32> to vector<8x128xf32>
    %326 = arith.addf %324, %325 : vector<8x128xf32>
    %327 = arith.index_cast %319 : i32 to index
    %c128_138 = arith.constant 128 : index
    %328 = vector.load %arg7[%327, %c128_138] : memref<64x256xf32, #tpu.memory_space<vmem>>, vector<8x128xf32>
    %329 = vector.extract_strided_slice %322 {offsets = [0, 128], sizes = [8, 128], strides = [1, 1]} : vector<8x256xf32> to vector<8x128xf32>
    %330 = arith.addf %328, %329 : vector<8x128xf32>
    %c0_139 = arith.constant 0 : index
    %c0_140 = arith.constant 0 : index
    %331 = vector.load %arg10[%c0_139, %c0_140] : memref<8x64xf32, #tpu.memory_space<vmem>>, vector<8x32xf32>
    %332 = vector.extract_strided_slice %326 {offsets = [0, 0], sizes = [8, 32], strides = [1, 1]} : vector<8x128xf32> to vector<8x32xf32>
    %333 = arith.negf %332 : vector<8x32xf32>
    %334 = math.exp %333 : vector<8x32xf32>
    %cst_141 = arith.constant 1.000000e+00 : f32
    %335 = vector.broadcast %cst_141 : f32 to vector<8x32xf32>
    %336 = arith.addf %335, %334 : vector<8x32xf32>
    %337 = arith.divf %335, %336 : vector<8x32xf32>
    %338 = vector.extract_strided_slice %326 {offsets = [0, 32], sizes = [8, 32], strides = [1, 1]} : vector<8x128xf32> to vector<8x32xf32>
    %339 = arith.negf %338 : vector<8x32xf32>
    %340 = math.exp %339 : vector<8x32xf32>
    %cst_142 = arith.constant 1.000000e+00 : f32
    %341 = vector.broadcast %cst_142 : f32 to vector<8x32xf32>
    %342 = arith.addf %341, %340 : vector<8x32xf32>
    %343 = arith.divf %341, %342 : vector<8x32xf32>
    %344 = vector.extract_strided_slice %326 {offsets = [0, 64], sizes = [8, 32], strides = [1, 1]} : vector<8x128xf32> to vector<8x32xf32>
    %345 = math.tanh %344 : vector<8x32xf32>
    %346 = vector.extract_strided_slice %326 {offsets = [0, 96], sizes = [8, 32], strides = [1, 1]} : vector<8x128xf32> to vector<8x32xf32>
    %347 = arith.negf %346 : vector<8x32xf32>
    %348 = math.exp %347 : vector<8x32xf32>
    %cst_143 = arith.constant 1.000000e+00 : f32
    %349 = vector.broadcast %cst_143 : f32 to vector<8x32xf32>
    %350 = arith.addf %349, %348 : vector<8x32xf32>
    %351 = arith.divf %349, %350 : vector<8x32xf32>
    %352 = arith.mulf %343, %331 : vector<8x32xf32>
    %353 = arith.mulf %337, %345 : vector<8x32xf32>
    %354 = arith.addf %352, %353 : vector<8x32xf32>
    %355 = math.tanh %354 : vector<8x32xf32>
    %356 = arith.mulf %351, %355 : vector<8x32xf32>
    %c0_144 = arith.constant 0 : index
    %c32_145 = arith.constant 32 : index
    %357 = vector.load %arg10[%c0_144, %c32_145] : memref<8x64xf32, #tpu.memory_space<vmem>>, vector<8x32xf32>
    %358 = vector.extract_strided_slice %330 {offsets = [0, 0], sizes = [8, 32], strides = [1, 1]} : vector<8x128xf32> to vector<8x32xf32>
    %359 = arith.negf %358 : vector<8x32xf32>
    %360 = math.exp %359 : vector<8x32xf32>
    %cst_146 = arith.constant 1.000000e+00 : f32
    %361 = vector.broadcast %cst_146 : f32 to vector<8x32xf32>
    %362 = arith.addf %361, %360 : vector<8x32xf32>
    %363 = arith.divf %361, %362 : vector<8x32xf32>
    %364 = vector.extract_strided_slice %330 {offsets = [0, 32], sizes = [8, 32], strides = [1, 1]} : vector<8x128xf32> to vector<8x32xf32>
    %365 = arith.negf %364 : vector<8x32xf32>
    %366 = math.exp %365 : vector<8x32xf32>
    %cst_147 = arith.constant 1.000000e+00 : f32
    %367 = vector.broadcast %cst_147 : f32 to vector<8x32xf32>
    %368 = arith.addf %367, %366 : vector<8x32xf32>
    %369 = arith.divf %367, %368 : vector<8x32xf32>
    %370 = vector.extract_strided_slice %330 {offsets = [0, 64], sizes = [8, 32], strides = [1, 1]} : vector<8x128xf32> to vector<8x32xf32>
    %371 = math.tanh %370 : vector<8x32xf32>
    %372 = vector.extract_strided_slice %330 {offsets = [0, 96], sizes = [8, 32], strides = [1, 1]} : vector<8x128xf32> to vector<8x32xf32>
    %373 = arith.negf %372 : vector<8x32xf32>
    %374 = math.exp %373 : vector<8x32xf32>
    %cst_148 = arith.constant 1.000000e+00 : f32
    %375 = vector.broadcast %cst_148 : f32 to vector<8x32xf32>
    %376 = arith.addf %375, %374 : vector<8x32xf32>
    %377 = arith.divf %375, %376 : vector<8x32xf32>
    %378 = arith.mulf %369, %357 : vector<8x32xf32>
    %379 = arith.mulf %363, %371 : vector<8x32xf32>
    %380 = arith.addf %378, %379 : vector<8x32xf32>
    %381 = math.tanh %380 : vector<8x32xf32>
    %382 = arith.mulf %377, %381 : vector<8x32xf32>
    %c0_149 = arith.constant 0 : index
    %c0_150 = arith.constant 0 : index
    %383 = vector.load %arg9[%c0_149, %c0_150] : memref<8x64xf32, #tpu.memory_space<vmem>>, vector<8x32xf32>
    tpu.vector_store %arg9[%c0_149, %c0_150], %356 {strides = array<i32>} : memref<8x64xf32, #tpu.memory_space<vmem>>, vector<8x32xf32>,
    %c0_151 = arith.constant 0 : index
    %c32_152 = arith.constant 32 : index
    %384 = vector.load %arg9[%c0_151, %c32_152] : memref<8x64xf32, #tpu.memory_space<vmem>>, vector<8x32xf32>
    tpu.vector_store %arg9[%c0_151, %c32_152], %382 {strides = array<i32>} : memref<8x64xf32, #tpu.memory_space<vmem>>, vector<8x32xf32>,
    %c0_153 = arith.constant 0 : index
    %c0_154 = arith.constant 0 : index
    %385 = vector.load %arg10[%c0_153, %c0_154] : memref<8x64xf32, #tpu.memory_space<vmem>>, vector<8x32xf32>
    tpu.vector_store %arg10[%c0_153, %c0_154], %354 {strides = array<i32>} : memref<8x64xf32, #tpu.memory_space<vmem>>, vector<8x32xf32>,
    %c0_155 = arith.constant 0 : index
    %c32_156 = arith.constant 32 : index
    %386 = vector.load %arg10[%c0_155, %c32_156] : memref<8x64xf32, #tpu.memory_space<vmem>>, vector<8x32xf32>
    tpu.vector_store %arg10[%c0_155, %c32_156], %380 {strides = array<i32>} : memref<8x64xf32, #tpu.memory_space<vmem>>, vector<8x32xf32>,
    %387 = arith.index_cast %316 : i32 to index
    %c0_157 = arith.constant 0 : index
    %388 = vector.load %arg8[%387, %c0_157] : memref<64x64xf32, #tpu.memory_space<vmem>>, vector<8x32xf32>
    tpu.vector_store %arg8[%387, %c0_157], %356 {strides = array<i32>} : memref<64x64xf32, #tpu.memory_space<vmem>>, vector<8x32xf32>,
    %389 = arith.index_cast %319 : i32 to index
    %c32_158 = arith.constant 32 : index
    %390 = vector.load %arg8[%389, %c32_158] : memref<64x64xf32, #tpu.memory_space<vmem>>, vector<8x32xf32>
    tpu.vector_store %arg8[%389, %c32_158], %382 {strides = array<i32>} : memref<64x64xf32, #tpu.memory_space<vmem>>, vector<8x32xf32>,
    %c5_i32 = arith.constant 5 : i32
    %c8_i32_159 = arith.constant 8 : i32
    %391 = arith.muli %c5_i32, %c8_i32_159 : i32
    %392 = tpu.assume_multiple %391, 8 : i32
    %c7_i32_160 = arith.constant 7 : i32
    %393 = arith.subi %c7_i32_160, %c5_i32 : i32
    %c8_i32_161 = arith.constant 8 : i32
    %394 = arith.muli %393, %c8_i32_161 : i32
    %395 = tpu.assume_multiple %394, 8 : i32
    %c0_162 = arith.constant 0 : index
    %c0_163 = arith.constant 0 : index
    %396 = vector.load %arg9[%c0_162, %c0_163] : memref<8x64xf32, #tpu.memory_space<vmem>>, vector<8x64xf32>
    %c0_164 = arith.constant 0 : index
    %c0_165 = arith.constant 0 : index
    %397 = vector.load %arg3[%c0_164, %c0_165] : memref<64x256xf32, #tpu.memory_space<vmem>>, vector<64x256xf32>
    %cst_166 = arith.constant dense<0.000000e+00> : vector<8x256xf32>
    %398 = tpu.matmul %396, %397, %cst_166 {dimension_numbers = #tpu.dot_dimension_numbers<[1], [0], [0], [1], [0, 0, 1, 1], [], []>} : vector<8x64xf32>, vector<64x256xf32>, vector<8x256xf32> -> vector<8x256xf32>
    %399 = arith.index_cast %392 : i32 to index
    %c0_167 = arith.constant 0 : index
    %400 = vector.load %arg7[%399, %c0_167] : memref<64x256xf32, #tpu.memory_space<vmem>>, vector<8x128xf32>
    %401 = vector.extract_strided_slice %398 {offsets = [0, 0], sizes = [8, 128], strides = [1, 1]} : vector<8x256xf32> to vector<8x128xf32>
    %402 = arith.addf %400, %401 : vector<8x128xf32>
    %403 = arith.index_cast %395 : i32 to index
    %c128_168 = arith.constant 128 : index
    %404 = vector.load %arg7[%403, %c128_168] : memref<64x256xf32, #tpu.memory_space<vmem>>, vector<8x128xf32>
    %405 = vector.extract_strided_slice %398 {offsets = [0, 128], sizes = [8, 128], strides = [1, 1]} : vector<8x256xf32> to vector<8x128xf32>
    %406 = arith.addf %404, %405 : vector<8x128xf32>
    %c0_169 = arith.constant 0 : index
    %c0_170 = arith.constant 0 : index
    %407 = vector.load %arg10[%c0_169, %c0_170] : memref<8x64xf32, #tpu.memory_space<vmem>>, vector<8x32xf32>
    %408 = vector.extract_strided_slice %402 {offsets = [0, 0], sizes = [8, 32], strides = [1, 1]} : vector<8x128xf32> to vector<8x32xf32>
    %409 = arith.negf %408 : vector<8x32xf32>
    %410 = math.exp %409 : vector<8x32xf32>
    %cst_171 = arith.constant 1.000000e+00 : f32
    %411 = vector.broadcast %cst_171 : f32 to vector<8x32xf32>
    %412 = arith.addf %411, %410 : vector<8x32xf32>
    %413 = arith.divf %411, %412 : vector<8x32xf32>
    %414 = vector.extract_strided_slice %402 {offsets = [0, 32], sizes = [8, 32], strides = [1, 1]} : vector<8x128xf32> to vector<8x32xf32>
    %415 = arith.negf %414 : vector<8x32xf32>
    %416 = math.exp %415 : vector<8x32xf32>
    %cst_172 = arith.constant 1.000000e+00 : f32
    %417 = vector.broadcast %cst_172 : f32 to vector<8x32xf32>
    %418 = arith.addf %417, %416 : vector<8x32xf32>
    %419 = arith.divf %417, %418 : vector<8x32xf32>
    %420 = vector.extract_strided_slice %402 {offsets = [0, 64], sizes = [8, 32], strides = [1, 1]} : vector<8x128xf32> to vector<8x32xf32>
    %421 = math.tanh %420 : vector<8x32xf32>
    %422 = vector.extract_strided_slice %402 {offsets = [0, 96], sizes = [8, 32], strides = [1, 1]} : vector<8x128xf32> to vector<8x32xf32>
    %423 = arith.negf %422 : vector<8x32xf32>
    %424 = math.exp %423 : vector<8x32xf32>
    %cst_173 = arith.constant 1.000000e+00 : f32
    %425 = vector.broadcast %cst_173 : f32 to vector<8x32xf32>
    %426 = arith.addf %425, %424 : vector<8x32xf32>
    %427 = arith.divf %425, %426 : vector<8x32xf32>
    %428 = arith.mulf %419, %407 : vector<8x32xf32>
    %429 = arith.mulf %413, %421 : vector<8x32xf32>
    %430 = arith.addf %428, %429 : vector<8x32xf32>
    %431 = math.tanh %430 : vector<8x32xf32>
    %432 = arith.mulf %427, %431 : vector<8x32xf32>
    %c0_174 = arith.constant 0 : index
    %c32_175 = arith.constant 32 : index
    %433 = vector.load %arg10[%c0_174, %c32_175] : memref<8x64xf32, #tpu.memory_space<vmem>>, vector<8x32xf32>
    %434 = vector.extract_strided_slice %406 {offsets = [0, 0], sizes = [8, 32], strides = [1, 1]} : vector<8x128xf32> to vector<8x32xf32>
    %435 = arith.negf %434 : vector<8x32xf32>
    %436 = math.exp %435 : vector<8x32xf32>
    %cst_176 = arith.constant 1.000000e+00 : f32
    %437 = vector.broadcast %cst_176 : f32 to vector<8x32xf32>
    %438 = arith.addf %437, %436 : vector<8x32xf32>
    %439 = arith.divf %437, %438 : vector<8x32xf32>
    %440 = vector.extract_strided_slice %406 {offsets = [0, 32], sizes = [8, 32], strides = [1, 1]} : vector<8x128xf32> to vector<8x32xf32>
    %441 = arith.negf %440 : vector<8x32xf32>
    %442 = math.exp %441 : vector<8x32xf32>
    %cst_177 = arith.constant 1.000000e+00 : f32
    %443 = vector.broadcast %cst_177 : f32 to vector<8x32xf32>
    %444 = arith.addf %443, %442 : vector<8x32xf32>
    %445 = arith.divf %443, %444 : vector<8x32xf32>
    %446 = vector.extract_strided_slice %406 {offsets = [0, 64], sizes = [8, 32], strides = [1, 1]} : vector<8x128xf32> to vector<8x32xf32>
    %447 = math.tanh %446 : vector<8x32xf32>
    %448 = vector.extract_strided_slice %406 {offsets = [0, 96], sizes = [8, 32], strides = [1, 1]} : vector<8x128xf32> to vector<8x32xf32>
    %449 = arith.negf %448 : vector<8x32xf32>
    %450 = math.exp %449 : vector<8x32xf32>
    %cst_178 = arith.constant 1.000000e+00 : f32
    %451 = vector.broadcast %cst_178 : f32 to vector<8x32xf32>
    %452 = arith.addf %451, %450 : vector<8x32xf32>
    %453 = arith.divf %451, %452 : vector<8x32xf32>
    %454 = arith.mulf %445, %433 : vector<8x32xf32>
    %455 = arith.mulf %439, %447 : vector<8x32xf32>
    %456 = arith.addf %454, %455 : vector<8x32xf32>
    %457 = math.tanh %456 : vector<8x32xf32>
    %458 = arith.mulf %453, %457 : vector<8x32xf32>
    %c0_179 = arith.constant 0 : index
    %c0_180 = arith.constant 0 : index
    %459 = vector.load %arg9[%c0_179, %c0_180] : memref<8x64xf32, #tpu.memory_space<vmem>>, vector<8x32xf32>
    tpu.vector_store %arg9[%c0_179, %c0_180], %432 {strides = array<i32>} : memref<8x64xf32, #tpu.memory_space<vmem>>, vector<8x32xf32>,
    %c0_181 = arith.constant 0 : index
    %c32_182 = arith.constant 32 : index
    %460 = vector.load %arg9[%c0_181, %c32_182] : memref<8x64xf32, #tpu.memory_space<vmem>>, vector<8x32xf32>
    tpu.vector_store %arg9[%c0_181, %c32_182], %458 {strides = array<i32>} : memref<8x64xf32, #tpu.memory_space<vmem>>, vector<8x32xf32>,
    %c0_183 = arith.constant 0 : index
    %c0_184 = arith.constant 0 : index
    %461 = vector.load %arg10[%c0_183, %c0_184] : memref<8x64xf32, #tpu.memory_space<vmem>>, vector<8x32xf32>
    tpu.vector_store %arg10[%c0_183, %c0_184], %430 {strides = array<i32>} : memref<8x64xf32, #tpu.memory_space<vmem>>, vector<8x32xf32>,
    %c0_185 = arith.constant 0 : index
    %c32_186 = arith.constant 32 : index
    %462 = vector.load %arg10[%c0_185, %c32_186] : memref<8x64xf32, #tpu.memory_space<vmem>>, vector<8x32xf32>
    tpu.vector_store %arg10[%c0_185, %c32_186], %456 {strides = array<i32>} : memref<8x64xf32, #tpu.memory_space<vmem>>, vector<8x32xf32>,
    %463 = arith.index_cast %392 : i32 to index
    %c0_187 = arith.constant 0 : index
    %464 = vector.load %arg8[%463, %c0_187] : memref<64x64xf32, #tpu.memory_space<vmem>>, vector<8x32xf32>
    tpu.vector_store %arg8[%463, %c0_187], %432 {strides = array<i32>} : memref<64x64xf32, #tpu.memory_space<vmem>>, vector<8x32xf32>,
    %465 = arith.index_cast %395 : i32 to index
    %c32_188 = arith.constant 32 : index
    %466 = vector.load %arg8[%465, %c32_188] : memref<64x64xf32, #tpu.memory_space<vmem>>, vector<8x32xf32>
    tpu.vector_store %arg8[%465, %c32_188], %458 {strides = array<i32>} : memref<64x64xf32, #tpu.memory_space<vmem>>, vector<8x32xf32>,
    %c6_i32 = arith.constant 6 : i32
    %c8_i32_189 = arith.constant 8 : i32
    %467 = arith.muli %c6_i32, %c8_i32_189 : i32
    %468 = tpu.assume_multiple %467, 8 : i32
    %c7_i32_190 = arith.constant 7 : i32
    %469 = arith.subi %c7_i32_190, %c6_i32 : i32
    %c8_i32_191 = arith.constant 8 : i32
    %470 = arith.muli %469, %c8_i32_191 : i32
    %471 = tpu.assume_multiple %470, 8 : i32
    %c0_192 = arith.constant 0 : index
    %c0_193 = arith.constant 0 : index
    %472 = vector.load %arg9[%c0_192, %c0_193] : memref<8x64xf32, #tpu.memory_space<vmem>>, vector<8x64xf32>
    %c0_194 = arith.constant 0 : index
    %c0_195 = arith.constant 0 : index
    %473 = vector.load %arg3[%c0_194, %c0_195] : memref<64x256xf32, #tpu.memory_space<vmem>>, vector<64x256xf32>
    %cst_196 = arith.constant dense<0.000000e+00> : vector<8x256xf32>
    %474 = tpu.matmul %472, %473, %cst_196 {dimension_numbers = #tpu.dot_dimension_numbers<[1], [0], [0], [1], [0, 0, 1, 1], [], []>} : vector<8x64xf32>, vector<64x256xf32>, vector<8x256xf32> -> vector<8x256xf32>
    %475 = arith.index_cast %468 : i32 to index
    %c0_197 = arith.constant 0 : index
    %476 = vector.load %arg7[%475, %c0_197] : memref<64x256xf32, #tpu.memory_space<vmem>>, vector<8x128xf32>
    %477 = vector.extract_strided_slice %474 {offsets = [0, 0], sizes = [8, 128], strides = [1, 1]} : vector<8x256xf32> to vector<8x128xf32>
    %478 = arith.addf %476, %477 : vector<8x128xf32>
    %479 = arith.index_cast %471 : i32 to index
    %c128_198 = arith.constant 128 : index
    %480 = vector.load %arg7[%479, %c128_198] : memref<64x256xf32, #tpu.memory_space<vmem>>, vector<8x128xf32>
    %481 = vector.extract_strided_slice %474 {offsets = [0, 128], sizes = [8, 128], strides = [1, 1]} : vector<8x256xf32> to vector<8x128xf32>
    %482 = arith.addf %480, %481 : vector<8x128xf32>
    %c0_199 = arith.constant 0 : index
    %c0_200 = arith.constant 0 : index
    %483 = vector.load %arg10[%c0_199, %c0_200] : memref<8x64xf32, #tpu.memory_space<vmem>>, vector<8x32xf32>
    %484 = vector.extract_strided_slice %478 {offsets = [0, 0], sizes = [8, 32], strides = [1, 1]} : vector<8x128xf32> to vector<8x32xf32>
    %485 = arith.negf %484 : vector<8x32xf32>
    %486 = math.exp %485 : vector<8x32xf32>
    %cst_201 = arith.constant 1.000000e+00 : f32
    %487 = vector.broadcast %cst_201 : f32 to vector<8x32xf32>
    %488 = arith.addf %487, %486 : vector<8x32xf32>
    %489 = arith.divf %487, %488 : vector<8x32xf32>
    %490 = vector.extract_strided_slice %478 {offsets = [0, 32], sizes = [8, 32], strides = [1, 1]} : vector<8x128xf32> to vector<8x32xf32>
    %491 = arith.negf %490 : vector<8x32xf32>
    %492 = math.exp %491 : vector<8x32xf32>
    %cst_202 = arith.constant 1.000000e+00 : f32
    %493 = vector.broadcast %cst_202 : f32 to vector<8x32xf32>
    %494 = arith.addf %493, %492 : vector<8x32xf32>
    %495 = arith.divf %493, %494 : vector<8x32xf32>
    %496 = vector.extract_strided_slice %478 {offsets = [0, 64], sizes = [8, 32], strides = [1, 1]} : vector<8x128xf32> to vector<8x32xf32>
    %497 = math.tanh %496 : vector<8x32xf32>
    %498 = vector.extract_strided_slice %478 {offsets = [0, 96], sizes = [8, 32], strides = [1, 1]} : vector<8x128xf32> to vector<8x32xf32>
    %499 = arith.negf %498 : vector<8x32xf32>
    %500 = math.exp %499 : vector<8x32xf32>
    %cst_203 = arith.constant 1.000000e+00 : f32
    %501 = vector.broadcast %cst_203 : f32 to vector<8x32xf32>
    %502 = arith.addf %501, %500 : vector<8x32xf32>
    %503 = arith.divf %501, %502 : vector<8x32xf32>
    %504 = arith.mulf %495, %483 : vector<8x32xf32>
    %505 = arith.mulf %489, %497 : vector<8x32xf32>
    %506 = arith.addf %504, %505 : vector<8x32xf32>
    %507 = math.tanh %506 : vector<8x32xf32>
    %508 = arith.mulf %503, %507 : vector<8x32xf32>
    %c0_204 = arith.constant 0 : index
    %c32_205 = arith.constant 32 : index
    %509 = vector.load %arg10[%c0_204, %c32_205] : memref<8x64xf32, #tpu.memory_space<vmem>>, vector<8x32xf32>
    %510 = vector.extract_strided_slice %482 {offsets = [0, 0], sizes = [8, 32], strides = [1, 1]} : vector<8x128xf32> to vector<8x32xf32>
    %511 = arith.negf %510 : vector<8x32xf32>
    %512 = math.exp %511 : vector<8x32xf32>
    %cst_206 = arith.constant 1.000000e+00 : f32
    %513 = vector.broadcast %cst_206 : f32 to vector<8x32xf32>
    %514 = arith.addf %513, %512 : vector<8x32xf32>
    %515 = arith.divf %513, %514 : vector<8x32xf32>
    %516 = vector.extract_strided_slice %482 {offsets = [0, 32], sizes = [8, 32], strides = [1, 1]} : vector<8x128xf32> to vector<8x32xf32>
    %517 = arith.negf %516 : vector<8x32xf32>
    %518 = math.exp %517 : vector<8x32xf32>
    %cst_207 = arith.constant 1.000000e+00 : f32
    %519 = vector.broadcast %cst_207 : f32 to vector<8x32xf32>
    %520 = arith.addf %519, %518 : vector<8x32xf32>
    %521 = arith.divf %519, %520 : vector<8x32xf32>
    %522 = vector.extract_strided_slice %482 {offsets = [0, 64], sizes = [8, 32], strides = [1, 1]} : vector<8x128xf32> to vector<8x32xf32>
    %523 = math.tanh %522 : vector<8x32xf32>
    %524 = vector.extract_strided_slice %482 {offsets = [0, 96], sizes = [8, 32], strides = [1, 1]} : vector<8x128xf32> to vector<8x32xf32>
    %525 = arith.negf %524 : vector<8x32xf32>
    %526 = math.exp %525 : vector<8x32xf32>
    %cst_208 = arith.constant 1.000000e+00 : f32
    %527 = vector.broadcast %cst_208 : f32 to vector<8x32xf32>
    %528 = arith.addf %527, %526 : vector<8x32xf32>
    %529 = arith.divf %527, %528 : vector<8x32xf32>
    %530 = arith.mulf %521, %509 : vector<8x32xf32>
    %531 = arith.mulf %515, %523 : vector<8x32xf32>
    %532 = arith.addf %530, %531 : vector<8x32xf32>
    %533 = math.tanh %532 : vector<8x32xf32>
    %534 = arith.mulf %529, %533 : vector<8x32xf32>
    %c0_209 = arith.constant 0 : index
    %c0_210 = arith.constant 0 : index
    %535 = vector.load %arg9[%c0_209, %c0_210] : memref<8x64xf32, #tpu.memory_space<vmem>>, vector<8x32xf32>
    tpu.vector_store %arg9[%c0_209, %c0_210], %508 {strides = array<i32>} : memref<8x64xf32, #tpu.memory_space<vmem>>, vector<8x32xf32>,
    %c0_211 = arith.constant 0 : index
    %c32_212 = arith.constant 32 : index
    %536 = vector.load %arg9[%c0_211, %c32_212] : memref<8x64xf32, #tpu.memory_space<vmem>>, vector<8x32xf32>
    tpu.vector_store %arg9[%c0_211, %c32_212], %534 {strides = array<i32>} : memref<8x64xf32, #tpu.memory_space<vmem>>, vector<8x32xf32>,
    %c0_213 = arith.constant 0 : index
    %c0_214 = arith.constant 0 : index
    %537 = vector.load %arg10[%c0_213, %c0_214] : memref<8x64xf32, #tpu.memory_space<vmem>>, vector<8x32xf32>
    tpu.vector_store %arg10[%c0_213, %c0_214], %506 {strides = array<i32>} : memref<8x64xf32, #tpu.memory_space<vmem>>, vector<8x32xf32>,
    %c0_215 = arith.constant 0 : index
    %c32_216 = arith.constant 32 : index
    %538 = vector.load %arg10[%c0_215, %c32_216] : memref<8x64xf32, #tpu.memory_space<vmem>>, vector<8x32xf32>
    tpu.vector_store %arg10[%c0_215, %c32_216], %532 {strides = array<i32>} : memref<8x64xf32, #tpu.memory_space<vmem>>, vector<8x32xf32>,
    %539 = arith.index_cast %468 : i32 to index
    %c0_217 = arith.constant 0 : index
    %540 = vector.load %arg8[%539, %c0_217] : memref<64x64xf32, #tpu.memory_space<vmem>>, vector<8x32xf32>
    tpu.vector_store %arg8[%539, %c0_217], %508 {strides = array<i32>} : memref<64x64xf32, #tpu.memory_space<vmem>>, vector<8x32xf32>,
    %541 = arith.index_cast %471 : i32 to index
    %c32_218 = arith.constant 32 : index
    %542 = vector.load %arg8[%541, %c32_218] : memref<64x64xf32, #tpu.memory_space<vmem>>, vector<8x32xf32>
    tpu.vector_store %arg8[%541, %c32_218], %534 {strides = array<i32>} : memref<64x64xf32, #tpu.memory_space<vmem>>, vector<8x32xf32>,
    %c7_i32_219 = arith.constant 7 : i32
    %c8_i32_220 = arith.constant 8 : i32
    %543 = arith.muli %c7_i32_219, %c8_i32_220 : i32
    %544 = tpu.assume_multiple %543, 8 : i32
    %c7_i32_221 = arith.constant 7 : i32
    %545 = arith.subi %c7_i32_221, %c7_i32_219 : i32
    %c8_i32_222 = arith.constant 8 : i32
    %546 = arith.muli %545, %c8_i32_222 : i32
    %547 = tpu.assume_multiple %546, 8 : i32
    %c0_223 = arith.constant 0 : index
    %c0_224 = arith.constant 0 : index
    %548 = vector.load %arg9[%c0_223, %c0_224] : memref<8x64xf32, #tpu.memory_space<vmem>>, vector<8x64xf32>
    %c0_225 = arith.constant 0 : index
    %c0_226 = arith.constant 0 : index
    %549 = vector.load %arg3[%c0_225, %c0_226] : memref<64x256xf32, #tpu.memory_space<vmem>>, vector<64x256xf32>
    %cst_227 = arith.constant dense<0.000000e+00> : vector<8x256xf32>
    %550 = tpu.matmul %548, %549, %cst_227 {dimension_numbers = #tpu.dot_dimension_numbers<[1], [0], [0], [1], [0, 0, 1, 1], [], []>} : vector<8x64xf32>, vector<64x256xf32>, vector<8x256xf32> -> vector<8x256xf32>
    %551 = arith.index_cast %544 : i32 to index
    %c0_228 = arith.constant 0 : index
    %552 = vector.load %arg7[%551, %c0_228] : memref<64x256xf32, #tpu.memory_space<vmem>>, vector<8x128xf32>
    %553 = vector.extract_strided_slice %550 {offsets = [0, 0], sizes = [8, 128], strides = [1, 1]} : vector<8x256xf32> to vector<8x128xf32>
    %554 = arith.addf %552, %553 : vector<8x128xf32>
    %555 = arith.index_cast %547 : i32 to index
    %c128_229 = arith.constant 128 : index
    %556 = vector.load %arg7[%555, %c128_229] : memref<64x256xf32, #tpu.memory_space<vmem>>, vector<8x128xf32>
    %557 = vector.extract_strided_slice %550 {offsets = [0, 128], sizes = [8, 128], strides = [1, 1]} : vector<8x256xf32> to vector<8x128xf32>
    %558 = arith.addf %556, %557 : vector<8x128xf32>
    %c0_230 = arith.constant 0 : index
    %c0_231 = arith.constant 0 : index
    %559 = vector.load %arg10[%c0_230, %c0_231] : memref<8x64xf32, #tpu.memory_space<vmem>>, vector<8x32xf32>
    %560 = vector.extract_strided_slice %554 {offsets = [0, 0], sizes = [8, 32], strides = [1, 1]} : vector<8x128xf32> to vector<8x32xf32>
    %561 = arith.negf %560 : vector<8x32xf32>
    %562 = math.exp %561 : vector<8x32xf32>
    %cst_232 = arith.constant 1.000000e+00 : f32
    %563 = vector.broadcast %cst_232 : f32 to vector<8x32xf32>
    %564 = arith.addf %563, %562 : vector<8x32xf32>
    %565 = arith.divf %563, %564 : vector<8x32xf32>
    %566 = vector.extract_strided_slice %554 {offsets = [0, 32], sizes = [8, 32], strides = [1, 1]} : vector<8x128xf32> to vector<8x32xf32>
    %567 = arith.negf %566 : vector<8x32xf32>
    %568 = math.exp %567 : vector<8x32xf32>
    %cst_233 = arith.constant 1.000000e+00 : f32
    %569 = vector.broadcast %cst_233 : f32 to vector<8x32xf32>
    %570 = arith.addf %569, %568 : vector<8x32xf32>
    %571 = arith.divf %569, %570 : vector<8x32xf32>
    %572 = vector.extract_strided_slice %554 {offsets = [0, 64], sizes = [8, 32], strides = [1, 1]} : vector<8x128xf32> to vector<8x32xf32>
    %573 = math.tanh %572 : vector<8x32xf32>
    %574 = vector.extract_strided_slice %554 {offsets = [0, 96], sizes = [8, 32], strides = [1, 1]} : vector<8x128xf32> to vector<8x32xf32>
    %575 = arith.negf %574 : vector<8x32xf32>
    %576 = math.exp %575 : vector<8x32xf32>
    %cst_234 = arith.constant 1.000000e+00 : f32
    %577 = vector.broadcast %cst_234 : f32 to vector<8x32xf32>
    %578 = arith.addf %577, %576 : vector<8x32xf32>
    %579 = arith.divf %577, %578 : vector<8x32xf32>
    %580 = arith.mulf %571, %559 : vector<8x32xf32>
    %581 = arith.mulf %565, %573 : vector<8x32xf32>
    %582 = arith.addf %580, %581 : vector<8x32xf32>
    %583 = math.tanh %582 : vector<8x32xf32>
    %584 = arith.mulf %579, %583 : vector<8x32xf32>
    %c0_235 = arith.constant 0 : index
    %c32_236 = arith.constant 32 : index
    %585 = vector.load %arg10[%c0_235, %c32_236] : memref<8x64xf32, #tpu.memory_space<vmem>>, vector<8x32xf32>
    %586 = vector.extract_strided_slice %558 {offsets = [0, 0], sizes = [8, 32], strides = [1, 1]} : vector<8x128xf32> to vector<8x32xf32>
    %587 = arith.negf %586 : vector<8x32xf32>
    %588 = math.exp %587 : vector<8x32xf32>
    %cst_237 = arith.constant 1.000000e+00 : f32
    %589 = vector.broadcast %cst_237 : f32 to vector<8x32xf32>
    %590 = arith.addf %589, %588 : vector<8x32xf32>
    %591 = arith.divf %589, %590 : vector<8x32xf32>
    %592 = vector.extract_strided_slice %558 {offsets = [0, 32], sizes = [8, 32], strides = [1, 1]} : vector<8x128xf32> to vector<8x32xf32>
    %593 = arith.negf %592 : vector<8x32xf32>
    %594 = math.exp %593 : vector<8x32xf32>
    %cst_238 = arith.constant 1.000000e+00 : f32
    %595 = vector.broadcast %cst_238 : f32 to vector<8x32xf32>
    %596 = arith.addf %595, %594 : vector<8x32xf32>
    %597 = arith.divf %595, %596 : vector<8x32xf32>
    %598 = vector.extract_strided_slice %558 {offsets = [0, 64], sizes = [8, 32], strides = [1, 1]} : vector<8x128xf32> to vector<8x32xf32>
    %599 = math.tanh %598 : vector<8x32xf32>
    %600 = vector.extract_strided_slice %558 {offsets = [0, 96], sizes = [8, 32], strides = [1, 1]} : vector<8x128xf32> to vector<8x32xf32>
    %601 = arith.negf %600 : vector<8x32xf32>
    %602 = math.exp %601 : vector<8x32xf32>
    %cst_239 = arith.constant 1.000000e+00 : f32
    %603 = vector.broadcast %cst_239 : f32 to vector<8x32xf32>
    %604 = arith.addf %603, %602 : vector<8x32xf32>
    %605 = arith.divf %603, %604 : vector<8x32xf32>
    %606 = arith.mulf %597, %585 : vector<8x32xf32>
    %607 = arith.mulf %591, %599 : vector<8x32xf32>
    %608 = arith.addf %606, %607 : vector<8x32xf32>
    %609 = math.tanh %608 : vector<8x32xf32>
    %610 = arith.mulf %605, %609 : vector<8x32xf32>
    %c0_240 = arith.constant 0 : index
    %c0_241 = arith.constant 0 : index
    %611 = vector.load %arg9[%c0_240, %c0_241] : memref<8x64xf32, #tpu.memory_space<vmem>>, vector<8x32xf32>
    tpu.vector_store %arg9[%c0_240, %c0_241], %584 {strides = array<i32>} : memref<8x64xf32, #tpu.memory_space<vmem>>, vector<8x32xf32>,
    %c0_242 = arith.constant 0 : index
    %c32_243 = arith.constant 32 : index
    %612 = vector.load %arg9[%c0_242, %c32_243] : memref<8x64xf32, #tpu.memory_space<vmem>>, vector<8x32xf32>
    tpu.vector_store %arg9[%c0_242, %c32_243], %610 {strides = array<i32>} : memref<8x64xf32, #tpu.memory_space<vmem>>, vector<8x32xf32>,
    %c0_244 = arith.constant 0 : index
    %c0_245 = arith.constant 0 : index
    %613 = vector.load %arg10[%c0_244, %c0_245] : memref<8x64xf32, #tpu.memory_space<vmem>>, vector<8x32xf32>
    tpu.vector_store %arg10[%c0_244, %c0_245], %582 {strides = array<i32>} : memref<8x64xf32, #tpu.memory_space<vmem>>, vector<8x32xf32>,
    %c0_246 = arith.constant 0 : index
    %c32_247 = arith.constant 32 : index
    %614 = vector.load %arg10[%c0_246, %c32_247] : memref<8x64xf32, #tpu.memory_space<vmem>>, vector<8x32xf32>
    tpu.vector_store %arg10[%c0_246, %c32_247], %608 {strides = array<i32>} : memref<8x64xf32, #tpu.memory_space<vmem>>, vector<8x32xf32>,
    %615 = arith.index_cast %544 : i32 to index
    %c0_248 = arith.constant 0 : index
    %616 = vector.load %arg8[%615, %c0_248] : memref<64x64xf32, #tpu.memory_space<vmem>>, vector<8x32xf32>
    tpu.vector_store %arg8[%615, %c0_248], %584 {strides = array<i32>} : memref<64x64xf32, #tpu.memory_space<vmem>>, vector<8x32xf32>,
    %617 = arith.index_cast %547 : i32 to index
    %c32_249 = arith.constant 32 : index
    %618 = vector.load %arg8[%617, %c32_249] : memref<64x64xf32, #tpu.memory_space<vmem>>, vector<8x32xf32>
    tpu.vector_store %arg8[%617, %c32_249], %610 {strides = array<i32>} : memref<64x64xf32, #tpu.memory_space<vmem>>, vector<8x32xf32>,
    %c8_i32_250 = arith.constant 8 : i32
    %c0_251 = arith.constant 0 : index
    %c0_252 = arith.constant 0 : index
    %619 = vector.load %arg8[%c0_251, %c0_252] : memref<64x64xf32, #tpu.memory_space<vmem>>, vector<64x64xf32>
    %c0_253 = arith.constant 0 : index
    %c0_254 = arith.constant 0 : index
    %620 = vector.load %arg4[%c0_253, %c0_254] : memref<64x128xf32, #tpu.memory_space<vmem>>, vector<64x128xf32>
    %cst_255 = arith.constant dense<0.000000e+00> : vector<64x128xf32>
    %621 = tpu.matmul %619, %620, %cst_255 {dimension_numbers = #tpu.dot_dimension_numbers<[1], [0], [0], [1], [0, 0, 1, 1], [], []>} : vector<64x64xf32>, vector<64x128xf32>, vector<64x128xf32> -> vector<64x128xf32>
    %c0_256 = arith.constant 0 : index
    %c0_257 = arith.constant 0 : index
    %622 = vector.load %arg5[%c0_256, %c0_257] : memref<1x128xf32, #tpu.memory_space<vmem>>, vector<1x128xf32>
    %623 = vector.broadcast %622 : vector<1x128xf32> to vector<64x128xf32>
    %624 = arith.addf %621, %623 : vector<64x128xf32>
    %c0_258 = arith.constant 0 : index
    %c0_259 = arith.constant 0 : index
    %625 = vector.load %arg6[%c0_258, %c0_259] : memref<64x128xf32, #tpu.memory_space<vmem>>, vector<64x128xf32>
    tpu.vector_store %arg6[%c0_258, %c0_259], %624 {strides = array<i32>} : memref<64x128xf32, #tpu.memory_space<vmem>>, vector<64x128xf32>,
    return
  }
}

</mosaic_0001>

<bundles_post_ra>
// kernel: bidirectional_lstm.1
= control target key start
LH: loop header
LB: loop body
LE: loop exit
PB: predicated region body
PF: predicated region fallthrough
CT: control target
= control target key end

     0   :  { %vm164_vm0 = vcmask 523264   ;;  %v1785_v2 = vmov 0.0   ;;  %vm41_vm1 = vcmask 130048   ;;  %s1786_s21 = smov 32   ;;  %s1788_s29 = smov 96   ;;  %vm320_vm10 = vcmask 261120   ;;  %s2370_s1 = inlined_call_operand.vmem [shape: f32[16,256], index: 1, kind: input, shape index: {}]   ;;  %s2371_s0 = inlined_call_operand.vmem [shape: f32[64,16], index: 0, kind: input, shape index: {}]   ;;  %s2372_s3 = inlined_call_operand.vmem [shape: f32[64,256], index: 3, kind: input, shape index: {}]   ;;  %s2373_s2 = inlined_call_operand.vmem [shape: f32[1,256], index: 2, kind: input, shape index: {}]   ;;  %s2374_s4 = inlined_call_operand.vmem [shape: f32[64,128], index: 4, kind: input, shape index: {}]   ;;  %s2375_s5 = inlined_call_operand.vmem [shape: f32[1,128], index: 5, kind: input, shape index: {}]   ;;  %s2376_s6 = inlined_call_operand.vmem [shape: f32[64,128], index: 6, kind: output, shape index: {}]  }
   0x1   :  { %v33_v0 = vld [vmem:[%s2370_s1 + $0x10] sm:$0xff]  ;;  %v31_v1 = vld [vmem:[%s2370_s1] sm:$0xff]  ;;  %165 = vst.msk [vmem:[#allocation4] sm:$0xff] %vm164_vm0, %v1785_v2  ;;  %v1837_v4 = vld [vmem:[%s2371_s0 + $0x18] sm:$0xff]  ;;  %vm326_vm11 = vcmask 523520  }
   0x2   :  { %80 = vmatpush.msra.mxu1 %v33_v0  ;;  %1648 = vmatpush.msra.mxu2 %v33_v0  ;;  %v23_v3 = vld [vmem:[%s2371_s0] sm:$0xff]  ;;  %166 = vst.msk [vmem:[#allocation5] sm:$0xff] %vm164_vm0, %v1785_v2  ;;  %v34_v5 = vld [vmem:[%s2370_s1 + $0x18] sm:$0xff]  ;;  %v1846_v6 = vld [vmem:[%s2372_s3 + $0x70] sm:$0xff] }
   0x3   :  { %1649 = vmatpush.msra.mxu3 %v33_v0  ;;  %v1854_v7 = vld [vmem:[%s2372_s3 + $0x60] sm:$0xff]  ;;  %v32_v8 = vld [vmem:[%s2370_s1 + $0x8] sm:$0xff]  ;;  %v1863_v9 = vld [vmem:[%s2372_s3 + $0x50] sm:$0xff] }
   0x4   :  { %81 = vmatpush.msra.mxu1 %v31_v1  ;;  %1650 = vmatpush.msra.mxu2 %v31_v1  ;;  %v1869_v10 = vld [vmem:[%s2372_s3 + $0x40] sm:$0xff]  ;;  %v24_v11 = vld [vmem:[%s2371_s0 + $0x8] sm:$0xff]  ;;  %v1883_v13 = vld [vmem:[%s2372_s3 + $0x30] sm:$0xff] }
   0x5   :  { %1592 = vmatmul.msk.f32.vlgmr.msra.gmra.mxu1 %vm41_vm1, %v23_v3  ;;  %1595 = vmatmul.msk.f32.vlgmr.msra.gmra.mxu2 %vm41_vm1, %v1837_v4  ;;  %v1877_v12 = vld [vmem:[%s2371_s0 + $0x20] sm:$0xff]  ;;  %v1898_v15 = vld [vmem:[%s2372_s3 + $0x10] sm:$0xff]  ;;  %v1912_v18 = vld [vmem:[%s2371_s0 + $0x28] sm:$0xff] }
   0x6   :  { %121 = vmatpush.msrb.mxu1 %v34_v5  ;;  %195 = vmatpush.msrb.mxu2 %v1846_v6  ;;  %v1892_v14 = vld [vmem:[%s2372_s3 + $0x20] sm:$0xff]  ;;  %v25_v17 = vld [vmem:[%s2371_s0 + $0x10] sm:$0xff]  ;;  %v1933_v21 = vld [vmem:[%s2372_s3 + $0x78] sm:$0xff] }
   0x7   :  { %1651 = vmatpush.msra.mxu3 %v31_v1  ;;  %v1904_v16 = vld [vmem:[%s2372_s3] sm:$0xff]  ;;  %v1928_v20 = vld [vmem:[%s2371_s0 + $0x30] sm:$0xff]  ;;  %v1940_v22 = vld [vmem:[%s2372_s3 + $0x68] sm:$0xff] }
   0x8   :  { %196 = vmatpush.msrb.mxu2 %v1854_v7  ;;  %122 = vmatpush.msrb.mxu1 %v32_v8  ;;  %v167_v19 = vld [vmem:[#allocation4] sm:$0xff]  ;;  %v1954_v23 = vld [vmem:[%s2372_s3 + $0x58] sm:$0xff]  ;;  %v1959_v24 = vld [vmem:[%s2372_s3 + $0x48] sm:$0xff] }
   0x9   :  { %1598 = vmatmul.msk.f32.vlgmr.msra.gmra.mxu3 %vm41_vm1, %v1928_v20  ;;  %v30_v25 = vld [vmem:[%s2371_s0 + $0x38] sm:$0xff]  ;;  %v1966_v26 = vld [vmem:[#allocation5] sm:$0xff]  ;;  %v35_v32 = vld [vmem:[%s2373_s2] sm:$0x3]  ;;  %s1787_s2 = smov 64  }
   0xa   :  { %197 = vmatpush.msrb.mxu2 %v1863_v9  ;;  %215 = vmatpush.msrb.mxu3 %v1933_v21  ;;  %v1973_v27 = vld [vmem:[%s2372_s3 + $0x38] sm:$0xff]  ;;  %v1982_v28 = vld [vmem:[%s2372_s3 + $0x28] sm:$0xff]  ;;  %v37_v33 = vperm.slane %v35_v32, 0  ;;  %v38_v42 = vperm.slane %v35_v32, 1 }
   0xb   :  { %892 = vmatpush.msra.mxu1 %v1933_v21  ;;  %259 = vrot.lane.b32.xlu1 %v1966_v26, %s1786_s21  ;;  %v1994_v29 = vld [vmem:[%s2372_s3 + $0x18] sm:$0xff]  ;;  %v1999_v30 = vld [vmem:[%s2372_s3 + $0x8] sm:$0xff] }
   0xc   :  { %198 = vmatpush.msrb.mxu2 %v1869_v10  ;;  %216 = vmatpush.msrb.mxu3 %v1940_v22 }
   0xd   :  { %1593 = vmatmul.msk.f32.gmra.mxu1 %vm41_vm1, %v24_v11  ;;  %1596 = vmatmul.msk.f32.gmra.mxu2 %vm41_vm1, %v1877_v12 }
   0xe   :  { %199 = vmatpush.msrb.mxu2 %v1883_v13  ;;  %893 = vmatpush.msra.mxu1 %v1940_v22 }
   0xf   :  { %217 = vmatpush.msrb.mxu3 %v1954_v23 }
  0x10   :  { %200 = vmatpush.msrb.mxu2 %v1892_v14  ;;  %894 = vmatpush.msra.mxu1 %v1954_v23 }
  0x11   :  { %1599 = vmatmul.msk.f32.gmra.mxu3 %vm41_vm1, %v30_v25 }
  0x12   :  { %201 = vmatpush.msrb.mxu2 %v1898_v15  ;;  %218 = vmatpush.msrb.mxu3 %v1959_v24 }
  0x13   :  { %895 = vmatpush.msra.mxu1 %v1959_v24 }
  0x14   :  { %202 = vmatpush.msrb.mxu2 %v1904_v16  ;;  %219 = vmatpush.msrb.mxu3 %v1973_v27 }
  0x15   :  { %1594 = vmatmul.msk.f32.gmra.mxu1 %vm41_vm1, %v25_v17  ;;  %1597 = vmatmul.msk.f32.gmra.mxu2 %vm41_vm1, %v1912_v18 }
  0x16   :  { %365 = vmatpush.msra.mxu2 %v1846_v6  ;;  %896 = vmatpush.msra.mxu1 %v1973_v27 }
  0x17   :  { %220 = vmatpush.msrb.mxu3 %v1982_v28 }
  0x18   :  { %366 = vmatpush.msra.mxu2 %v1854_v7  ;;  %897 = vmatpush.msra.mxu1 %v1982_v28 }
  0x19   :  { %221 = vmatpush.msrb.mxu3 %v1994_v29 }
  0x1a   :  { %367 = vmatpush.msra.mxu2 %v1863_v9  ;;  %898 = vmatpush.msra.mxu1 %v1994_v29 }
  0x1b   :  { %222 = vmatpush.msrb.mxu3 %v1999_v30 }
  0x1c   :  { %368 = vmatpush.msra.mxu2 %v1869_v10  ;;  %1609 = vmatmul.msk.f32.vlgmr.msrb.gmra.mxu3 %vm164_vm0, %v167_v19 }
  0x1d   :  { %1600 = vmatmul.msk.f32.vlgmr.msrb.gmra.mxu1 %vm41_vm1, %v23_v3  ;;  %1608 = vmatmul.msk.f32.vlgmr.msrb.gmra.mxu2 %vm164_vm0, %v167_v19 }
  0x1e   :  { %369 = vmatpush.msra.mxu2 %v1883_v13  ;;  %385 = vmatpush.msra.mxu3 %v1933_v21 }
  0x1f   :  { %899 = vmatpush.msra.mxu1 %v1999_v30 }
  0x20   :  { %370 = vmatpush.msra.mxu2 %v1892_v14  ;;  %386 = vmatpush.msra.mxu3 %v1940_v22 }
  0x22   :  { %371 = vmatpush.msra.mxu2 %v1898_v15  ;;  %387 = vmatpush.msra.mxu3 %v1954_v23 }
  0x24   :  { %372 = vmatpush.msra.mxu2 %v1904_v16  ;;  %388 = vmatpush.msra.mxu3 %v1959_v24 }
  0x25   :  { %1601 = vmatmul.msk.f32.gmra.mxu1 %vm41_vm1, %v24_v11 }
  0x26   :  { %534 = vmatpush.msrb.mxu2 %v1846_v6  ;;  %389 = vmatpush.msra.mxu3 %v1973_v27 }
  0x28   :  { %535 = vmatpush.msrb.mxu2 %v1854_v7  ;;  %390 = vmatpush.msra.mxu3 %v1982_v28 }
  0x2a   :  { %536 = vmatpush.msrb.mxu2 %v1863_v9  ;;  %391 = vmatpush.msra.mxu3 %v1994_v29 }
  0x2c   :  { %537 = vmatpush.msrb.mxu2 %v1869_v10  ;;  %392 = vmatpush.msra.mxu3 %v1999_v30 }
  0x2d   :  { %1602 = vmatmul.msk.f32.gmra.mxu1 %vm41_vm1, %v25_v17 }
  0x2e   :  { %538 = vmatpush.msrb.mxu2 %v1883_v13  ;;  %554 = vmatpush.msrb.mxu3 %v1933_v21 }
  0x30   :  { %539 = vmatpush.msrb.mxu2 %v1892_v14  ;;  %555 = vmatpush.msrb.mxu3 %v1940_v22 }
  0x32   :  { %540 = vmatpush.msrb.mxu2 %v1898_v15  ;;  %556 = vmatpush.msrb.mxu3 %v1954_v23 }
  0x34   :  { %541 = vmatpush.msrb.mxu2 %v1904_v16  ;;  %557 = vmatpush.msrb.mxu3 %v1959_v24 }
  0x35   :  { %1603 = vmatmul.msk.f32.gmra.mxu1 %vm41_vm1, %v1837_v4 }
  0x36   :  { %558 = vmatpush.msrb.mxu3 %v1973_v27 }
  0x38   :  { %559 = vmatpush.msrb.mxu3 %v1982_v28 }
  0x3a   :  { %560 = vmatpush.msrb.mxu3 %v1994_v29 }
  0x3c   :  { %561 = vmatpush.msrb.mxu3 %v1999_v30 }
  0x3d   :  { %1604 = vmatmul.msk.f32.gmra.mxu1 %vm41_vm1, %v1877_v12 }
  0x45   :  { %1605 = vmatmul.msk.f32.gmra.mxu1 %vm41_vm1, %v1912_v18 }
  0x4d   :  { %1606 = vmatmul.msk.f32.gmra.mxu1 %vm41_vm1, %v1928_v20 }
  0x55   :  { %1607 = vmatmul.msk.f32.gmra.mxu1 %vm41_vm1, %v30_v25 }
  0x82   :  { %v83_v31 = vpop.f32.mrf.mxu1 }
  0x83   :  { %v84_v47 = vadd.f32 %v83_v31, %v37_v33 }
  0x88   :  { %v92_v34 = vpop.f32.mrf.mxu2 }
  0x89   :  { %v2039_v35 = vadd.f32 %v92_v34, %v37_v33 }
  0x8a   :  { %v86_v36 = vpop.f32.mrf.mxu1 }
  0x8b   :  { %v2041_v37 = vadd.f32 %v86_v36, %v37_v33 }
  0x8c   :  { %v101_v52 = vpop.f32.mrf.mxu3 }
  0x8d   :  { %v2053_v53 = vadd.f32 %v101_v52, %v37_v33 }
  0x90   :  { %v95_v38 = vpop.f32.mrf.mxu2 }
  0x91   :  { %v2043_v39 = vadd.f32 %v95_v38, %v37_v33 }
  0x92   :  { %v89_v40 = vpop.f32.mrf.mxu1 }
  0x93   :  { %v2045_v41 = vadd.f32 %v89_v40, %v37_v33 }
  0x94   :  { %v104_v57 = vpop.f32.mrf.mxu3 }
  0x95   :  { %v2058_v58 = vadd.f32 %v104_v57, %v37_v33 }
  0x98   :  { %v98_v43 = vpop.f32.mrf.mxu2 }
  0x99   :  { %v2047_v44 = vadd.f32 %v98_v43, %v37_v33 }
  0x9a   :  { %v124_v45 = vpop.f32.mrf.mxu1 }
  0x9b   :  { %v2049_v46 = vadd.f32 %v124_v45, %v38_v42 }
  0x9f   :  { %v224_v4 = vpop.f32.mrf.mxu3 }
  0xa0   :  { %v204_v48 = vpop.f32.mrf.mxu2 }
  0xa1   :  { %v231_v49 = vadd.f32 %v204_v48, %v84_v47 }
  0xa2   :  { %v127_v50 = vpop.f32.mrf.mxu1 }
  0xa3   :  { %1657 = vtanh.f32 %v231_v49  ;;  %v2051_v51 = vadd.f32 %v127_v50, %v38_v42  ;;  %v1610_v12 = vmul.f32 -1.442695, %v231_v49 }
  0xa9   :  { %v1658_v54 = vpop.eup %1657 }
  0xaa   :  { %v130_v55 = vpop.f32.mrf.mxu1  ;;  %264 = vrot.lane.b32.xlu0 %v1658_v54, %s1787_s2 }
  0xab   :  { %v2056_v56 = vadd.f32 %v130_v55, %v38_v42 }
  0xb2   :  { %v133_v59 = vpop.f32.mrf.mxu1 }
  0xb3   :  { %v2060_v60 = vadd.f32 %v133_v59, %v38_v42 }
  0xba   :  { %v136_v61 = vpop.f32.mrf.mxu1 }
  0xbb   :  { %v2062_v62 = vadd.f32 %v136_v61, %v38_v42 }
  0xc2   :  { %v139_v63 = vpop.f32.mrf.mxu1 }
  0xc3   :  { %v2064_v0 = vadd.f32 %v139_v63, %v38_v42 }
  0xca   :  { %v142_v1 = vpop.f32.mrf.mxu1 }
  0xcb   :  { %v2066_v2 = vadd.f32 %v142_v1, %v38_v42 }
  0xd2   :  { %v145_v3 = vpop.f32.mrf.mxu1 }
  0xd3   :  { %v146_v5 = vadd.f32 %v145_v3, %v38_v42 }
  0xd5   :  { %v236_v8 = vadd.f32 %v224_v4, %v146_v5  ;;  %v260_v5 = vpop.permute.xlu1 %259 }
  0xd7   :  { %1659 = vtanh.f32 %v236_v8  ;;  %v1611_v45 = vmul.f32 -1.442695, %v236_v8 }
  0xd8   :  { %1661 = vpow2.f32 %v1610_v12 }
  0xdd   :  { %v1660_v11 = vpop.eup %1659 }
  0xde   :  { %301 = vrot.lane.b32.xlu0 %v1660_v11, %s1787_s2  ;;  %v1662_v17 = vpop.eup %1661 }
  0xdf   :  { %v241_v18 = vadd.f32 1.0, %v1662_v17 }
  0xe1   :  { %1663 = vrcp.f32 %v241_v18  ;;  %v253_v33 = vand.u32 2147483648, %v241_v18  ;;  %vm247_vm3 = vweird.f32 %v241_v18  ;;  %v251_v34 = vand.u32 2147483647, %v241_v18 }
  0xe2   :  { %1665 = vpow2.f32 %v1611_v45 }
  0xe3   :  { %v254_v38 = vor.u32 1.1754944e-38, %v253_v33  ;;  %vm252_vm5 = vcmp.eq.f32.partialorder %v251_v34, 8.507059e+37 }
  0xe7   :  { %v1664_v19 = vpop.eup %1663 }
  0xe8   :  { %v243_v20 = vmul.f32 %v1664_v19, %v241_v18  ;;  %vm248_vm2 = vweird.f32 %v1664_v19  ;;  %v1666_v47 = vpop.eup %1665 }
  0xe9   :  { %vm249_vm4 = vmor %vm247_vm3, %vm248_vm2  ;;  %v282_v48 = vadd.f32 1.0, %v1666_v47 }
  0xea   :  { %v244_v25 = vsub.f32 1.0, %v243_v20 }
  0xeb   :  { %1667 = vrcp.f32 %v282_v48  ;;  %v294_v57 = vand.u32 2147483648, %v282_v48  ;;  %vm288_vm7 = vweird.f32 %v282_v48  ;;  %v292_v59 = vand.u32 2147483647, %v282_v48 }
  0xec   :  { %v245_v31 = vmul.f32 %v1664_v19, %v244_v25 }
  0xed   :  { %v295_v63 = vor.u32 1.1754944e-38, %v294_v57  ;;  %vm293_vm9 = vcmp.eq.f32.partialorder %v292_v59, 8.507059e+37 }
  0xee   :  { %v246_v32 = vadd.f32 %v1664_v19, %v245_v31 }
  0xf0   :  { %v250_v36 = vsel %vm249_vm4, %v1664_v19, %v246_v32 }
  0xf1   :  { %v255_v40 = vsel %vm252_vm5, %v254_v38, %v250_v36  ;;  %v1668_v49 = vpop.eup %1667 }
  0xf2   :  { %v284_v50 = vmul.f32 %v1668_v49, %v282_v48  ;;  %vm289_vm6 = vweird.f32 %v1668_v49  ;;  %v262_v8 = vmul.f32 %v260_v5, %v255_v40 }
  0xf3   :  { %vm290_vm8 = vmor %vm288_vm7, %vm289_vm6 }
  0xf4   :  { %v285_v52 = vsub.f32 1.0, %v284_v50 }
  0xf6   :  { %v286_v54 = vmul.f32 %v1668_v49, %v285_v52 }
  0xf8   :  { %v287_v55 = vadd.f32 %v1668_v49, %v286_v54 }
  0xfa   :  { %v291_v61 = vsel %vm290_vm8, %v1668_v49, %v287_v55 }
  0xfb   :  { %v296_v1 = vsel %vm293_vm9, %v295_v63, %v291_v61 }
  0xfc   :  { %v299_v18 = vmul.f32 %v296_v1, %v1966_v26 }
 0x11c   :  { %v265_v42 = vpop.permute.xlu0 %264 }
 0x11d   :  { %v267_v43 = vmul.f32 %v265_v42, %v255_v40 }
 0x11f   :  { %269 = vrot.lane.b32.xlu1 %v267_v43, %s1786_s21 }
 0x150   :  { %v302_v3 = vpop.permute.xlu0 %301 }
 0x151   :  { %v304_v4 = vmul.f32 %v302_v3, %v296_v1 }
 0x153   :  { %306 = vrot.lane.b32.xlu2 %v304_v4, %s1786_s21 }
 0x191   :  { %v270_v11 = vpop.permute.xlu1 %269 }
 0x192   :  { %v272_v12 = vadd.f32 %v270_v11, %v262_v8 }
 0x194   :  { %1669 = vtanh.f32 %v272_v12 }
 0x19a   :  { %v1670_v17 = vpop.eup %1669 }
 0x19b   :  { %275 = vrot.lane.b32.xlu2 %v1670_v17, %s1787_s2 }
 0x1ad   :  { %v307_v19 = vpop.permute.xlu2 %306 }
 0x1ae   :  { %v309_v20 = vadd.f32 %v307_v19, %v299_v18 }
 0x1b0   :  { %1671 = vtanh.f32 %v309_v20 }
 0x1b6   :  { %v1672_v25 = vpop.eup %1671 }
 0x1b7   :  { %312 = vrot.lane.b32.xlu0 %v1672_v25, %s1787_s2 }
 0x1bf   :  { %329 = vrot.lane.b32.xlu0 %v272_v12, %s1788_s29 }
 0x1f5   :  { %v276_v31 = vpop.permute.xlu2 %275 }
 0x1f6   :  { %v278_v32 = vmul.f32 %v276_v31, %v255_v40 }
 0x1f8   :  { %317 = vrot.lane.b32.xlu1 %v278_v32, %s1786_s21 }
 0x229   :  { %v313_v33 = vpop.permute.xlu0 %312 }
 0x22a   :  { %v315_v34 = vmul.f32 %v313_v33, %v296_v1 }
 0x22c   :  { %323 = vrot.lane.b32.xlu2 %v315_v34, %s1787_s2 }
 0x231   :  { %v330_v26 = vpop.permute.xlu0 %329 }
 0x232   :  { %332 = vst.msk [vmem:[#allocation5] sm:$0xff] %vm320_vm10, %v330_v26 }
 0x233   :  { %333 = vst.msk [vmem:[#allocation5] sm:$0xff] %vm326_vm11, %v309_v20 }
 0x23a   :  { %v2079_v36 = vld [vmem:[#allocation5] sm:$0xff] }
 0x23b   :  { %429 = vrot.lane.b32.xlu0 %v2079_v36, %s1786_s21 }
 0x26a   :  { %v318_v38 = vpop.permute.xlu1 %317 }
 0x26b   :  { %321 = vst.msk [vmem:[#allocation4] sm:$0xff] %vm320_vm10, %v318_v38 }
 0x26c   :  { %334 = vst.msk [vmem:[#allocation3] sm:$0xff] %vm320_vm10, %v318_v38 }
 0x286   :  { %v324_v40 = vpop.permute.xlu2 %323 }
 0x287   :  { %327 = vst.msk [vmem:[#allocation4] sm:$0xff] %vm326_vm11, %v324_v40 }
 0x288   :  { %336 = vst.msk [vmem:[#allocation3 + $0x38] sm:$0xff] %vm326_vm11, %v324_v40 }
 0x28e   :  { %v337_v42 = vld [vmem:[#allocation4] sm:$0xff] }
 0x28f   :  { %1612 = vmatmul.msk.f32.vlgmr.msra.gmra.mxu2 %vm164_vm0, %v337_v42  ;;  %1613 = vmatmul.msk.f32.vlgmr.msra.gmra.mxu3 %vm164_vm0, %v337_v42 }
 0x290   :  { %703 = vmatpush.msra.mxu2 %v1846_v6  ;;  %723 = vmatpush.msra.mxu3 %v1933_v21 }
 0x292   :  { %704 = vmatpush.msra.mxu2 %v1854_v7  ;;  %724 = vmatpush.msra.mxu3 %v1940_v22 }
 0x294   :  { %705 = vmatpush.msra.mxu2 %v1863_v9  ;;  %725 = vmatpush.msra.mxu3 %v1954_v23 }
 0x296   :  { %706 = vmatpush.msra.mxu2 %v1869_v10  ;;  %726 = vmatpush.msra.mxu3 %v1959_v24 }
 0x298   :  { %707 = vmatpush.msra.mxu2 %v1883_v13  ;;  %727 = vmatpush.msra.mxu3 %v1973_v27 }
 0x29a   :  { %708 = vmatpush.msra.mxu2 %v1892_v14  ;;  %728 = vmatpush.msra.mxu3 %v1982_v28 }
 0x29c   :  { %709 = vmatpush.msra.mxu2 %v1898_v15  ;;  %729 = vmatpush.msra.mxu3 %v1994_v29 }
 0x29e   :  { %710 = vmatpush.msra.mxu2 %v1904_v16  ;;  %730 = vmatpush.msra.mxu3 %v1999_v30 }
 0x2ad   :  { %v430_v19 = vpop.permute.xlu0 %429 }
 0x312   :  { %v374_v6 = vpop.f32.mrf.mxu2  ;;  %v394_v7 = vpop.f32.mrf.mxu3 }
 0x313   :  { %v401_v9 = vadd.f32 %v374_v6, %v2041_v37  ;;  %v406_v10 = vadd.f32 %v394_v7, %v2066_v2 }
 0x315   :  { %1673 = vtanh.f32 %v401_v9  ;;  %v1615_v15 = vmul.f32 -1.442695, %v406_v10  ;;  %v1614_v23 = vmul.f32 -1.442695, %v401_v9 }
 0x316   :  { %1675 = vtanh.f32 %v406_v10 }
 0x317   :  { %1677 = vpow2.f32 %v1615_v15 }
 0x31b   :  { %v1674_v13 = vpop.eup %1673 }
 0x31c   :  { %v1676_v14 = vpop.eup %1675  ;;  %434 = vrot.lane.b32.xlu1 %v1674_v13, %s1787_s2 }
 0x31d   :  { %471 = vrot.lane.b32.xlu2 %v1676_v14, %s1787_s2  ;;  %v1678_v21 = vpop.eup %1677 }
 0x31e   :  { %v452_v16 = vadd.f32 1.0, %v1678_v21 }
 0x320   :  { %1679 = vrcp.f32 %v452_v16  ;;  %v464_v2 = vand.u32 2147483648, %v452_v16  ;;  %vm458_vm13 = vweird.f32 %v452_v16  ;;  %v462_v43 = vand.u32 2147483647, %v452_v16 }
 0x321   :  { %1681 = vpow2.f32 %v1614_v23 }
 0x322   :  { %v465_v47 = vor.u32 1.1754944e-38, %v464_v2  ;;  %vm463_vm15 = vcmp.eq.f32.partialorder %v462_v43, 8.507059e+37 }
 0x326   :  { %v1680_v22 = vpop.eup %1679 }
 0x327   :  { %v454_v24 = vmul.f32 %v1680_v22, %v452_v16  ;;  %v1682_v28 = vpop.eup %1681  ;;  %vm459_vm12 = vweird.f32 %v1680_v22 }
 0x328   :  { %v411_v30 = vadd.f32 1.0, %v1682_v28  ;;  %vm460_vm14 = vmor %vm458_vm13, %vm459_vm12 }
 0x329   :  { %v455_v27 = vsub.f32 1.0, %v454_v24 }
 0x32a   :  { %1683 = vrcp.f32 %v411_v30  ;;  %v423_v61 = vand.u32 2147483648, %v411_v30  ;;  %vm417_vm2 = vweird.f32 %v411_v30  ;;  %v421_v63 = vand.u32 2147483647, %v411_v30 }
 0x32b   :  { %v456_v29 = vmul.f32 %v1680_v22, %v455_v27 }
 0x32c   :  { %v424_v3 = vor.u32 1.1754944e-38, %v423_v61  ;;  %vm422_vm4 = vcmp.eq.f32.partialorder %v421_v63, 8.507059e+37 }
 0x32d   :  { %v457_v37 = vadd.f32 %v1680_v22, %v456_v29 }
 0x32f   :  { %v461_v45 = vsel %vm460_vm14, %v1680_v22, %v457_v37 }
 0x330   :  { %v466_v49 = vsel %vm463_vm15, %v465_v47, %v461_v45  ;;  %v1684_v50 = vpop.eup %1683 }
 0x331   :  { %v413_v54 = vmul.f32 %v1684_v50, %v411_v30  ;;  %vm418_vm1 = vweird.f32 %v1684_v50  ;;  %v469_v11 = vmul.f32 %v466_v49, %v2079_v36 }
 0x332   :  { %vm419_vm3 = vmor %vm417_vm2, %vm418_vm1 }
 0x333   :  { %v414_v55 = vsub.f32 1.0, %v413_v54 }
 0x335   :  { %v415_v57 = vmul.f32 %v1684_v50, %v414_v55 }
 0x337   :  { %v416_v59 = vadd.f32 %v1684_v50, %v415_v57 }
 0x339   :  { %v420_v1 = vsel %vm419_vm3, %v1684_v50, %v416_v59 }
 0x33a   :  { %v425_v5 = vsel %vm422_vm4, %v424_v3, %v420_v1 }
 0x33b   :  { %v432_v20 = vmul.f32 %v430_v19, %v425_v5 }
 0x377   :  { %v472_v48 = vpop.permute.xlu2 %471 }
 0x378   :  { %v474_v52 = vmul.f32 %v472_v48, %v466_v49 }
 0x37a   :  { %476 = vrot.lane.b32.xlu2 %v474_v52, %s1786_s21 }
 0x38e   :  { %v435_v4 = vpop.permute.xlu1 %434 }
 0x38f   :  { %v437_v8 = vmul.f32 %v435_v4, %v425_v5 }
 0x391   :  { %439 = vrot.lane.b32.xlu1 %v437_v8, %s1786_s21 }
 0x3d4   :  { %v477_v12 = vpop.permute.xlu2 %476 }
 0x3d5   :  { %v479_v17 = vadd.f32 %v477_v12, %v469_v11 }
 0x3d7   :  { %1685 = vtanh.f32 %v479_v17 }
 0x3dd   :  { %v1686_v18 = vpop.eup %1685 }
 0x3de   :  { %482 = vrot.lane.b32.xlu1 %v1686_v18, %s1787_s2 }
 0x403   :  { %v440_v25 = vpop.permute.xlu1 %439 }
 0x404   :  { %v442_v31 = vadd.f32 %v440_v25, %v432_v20 }
 0x406   :  { %1687 = vtanh.f32 %v442_v31  ;;  %497 = vrot.lane.b32.xlu1 %v442_v31, %s1788_s29 }
 0x40c   :  { %v1688_v32 = vpop.eup %1687 }
 0x40d   :  { %445 = vrot.lane.b32.xlu0 %v1688_v32, %s1787_s2 }
 0x450   :  { %v483_v33 = vpop.permute.xlu1 %482 }
 0x451   :  { %v485_v34 = vmul.f32 %v483_v33, %v466_v49 }
 0x453   :  { %492 = vrot.lane.b32.xlu0 %v485_v34, %s1787_s2 }
 0x478   :  { %v498_v26 = vpop.permute.xlu1 %497 }
 0x479   :  { %500 = vst.msk [vmem:[#allocation5] sm:$0xff] %vm320_vm10, %v498_v26 }
 0x47a   :  { %501 = vst.msk [vmem:[#allocation5] sm:$0xff] %vm326_vm11, %v479_v17 }
 0x47f   :  { %v446_v36 = vpop.permute.xlu0 %445 }
 0x480   :  { %v448_v38 = vmul.f32 %v446_v36, %v425_v5 }
 0x481   :  { %v2118_v40 = vld [vmem:[#allocation5] sm:$0xff] }
 0x482   :  { %598 = vrot.lane.b32.xlu1 %v2118_v40, %s1786_s21  ;;  %487 = vrot.lane.b32.xlu2 %v448_v38, %s1786_s21 }
 0x4c5   :  { %v493_v42 = vpop.permute.xlu0 %492 }
 0x4c6   :  { %505 = vst.msk [vmem:[#allocation3 + $0x30] sm:$0xff] %vm326_vm11, %v493_v42 }
 0x4dc   :  { %v488_v6 = vpop.permute.xlu2 %487 }
 0x4dd   :  { %490 = vst.msk [vmem:[#allocation4] sm:$0xff] %vm320_vm10, %v488_v6 }
 0x4de   :  { %495 = vst.msk [vmem:[#allocation4] sm:$0xff] %vm326_vm11, %v493_v42 }
 0x4df   :  { %503 = vst.msk [vmem:[#allocation3 + $0x8] sm:$0xff] %vm320_vm10, %v488_v6 }
 0x4e5   :  { %v506_v7 = vld [vmem:[#allocation4] sm:$0xff] }
 0x4e6   :  { %1616 = vmatmul.msk.f32.vlgmr.msrb.gmra.mxu2 %vm164_vm0, %v506_v7  ;;  %1617 = vmatmul.msk.f32.vlgmr.msrb.gmra.mxu3 %vm164_vm0, %v506_v7 }
 0x4f4   :  { %v599_v11 = vpop.permute.xlu1 %598 }
 0x569   :  { %v543_v9 = vpop.f32.mrf.mxu2  ;;  %v563_v10 = vpop.f32.mrf.mxu3 }
 0x56a   :  { %v570_v13 = vadd.f32 %v543_v9, %v2045_v41  ;;  %v575_v14 = vadd.f32 %v563_v10, %v2064_v0 }
 0x56c   :  { %1689 = vtanh.f32 %v570_v13  ;;  %v1618_v16 = vmul.f32 -1.442695, %v570_v13  ;;  %v1619_v27 = vmul.f32 -1.442695, %v575_v14 }
 0x56d   :  { %1691 = vtanh.f32 %v575_v14 }
 0x56e   :  { %1693 = vpow2.f32 %v1618_v16 }
 0x572   :  { %v1690_v15 = vpop.eup %1689 }
 0x573   :  { %v1692_v21 = vpop.eup %1691  ;;  %603 = vrot.lane.b32.xlu2 %v1690_v15, %s1787_s2 }
 0x574   :  { %640 = vrot.lane.b32.xlu0 %v1692_v21, %s1787_s2  ;;  %v1694_v22 = vpop.eup %1693 }
 0x575   :  { %v580_v23 = vadd.f32 1.0, %v1694_v22 }
 0x577   :  { %1695 = vrcp.f32 %v580_v23  ;;  %v592_v2 = vand.u32 2147483648, %v580_v23  ;;  %vm586_vm6 = vweird.f32 %v580_v23  ;;  %v590_v43 = vand.u32 2147483647, %v580_v23 }
 0x578   :  { %1697 = vpow2.f32 %v1619_v27 }
 0x579   :  { %v593_v47 = vor.u32 1.1754944e-38, %v592_v2  ;;  %vm591_vm8 = vcmp.eq.f32.partialorder %v590_v43, 8.507059e+37 }
 0x57d   :  { %v1696_v24 = vpop.eup %1695 }
 0x57e   :  { %v582_v28 = vmul.f32 %v1696_v24, %v580_v23  ;;  %v1698_v0 = vpop.eup %1697  ;;  %vm587_vm5 = vweird.f32 %v1696_v24 }
 0x57f   :  { %v621_v30 = vadd.f32 1.0, %v1698_v0  ;;  %vm588_vm7 = vmor %vm586_vm6, %vm587_vm5 }
 0x580   :  { %v583_v41 = vsub.f32 1.0, %v582_v28 }
 0x581   :  { %1699 = vrcp.f32 %v621_v30  ;;  %v633_v61 = vand.u32 2147483648, %v621_v30  ;;  %vm627_vm12 = vweird.f32 %v621_v30  ;;  %v631_v63 = vand.u32 2147483647, %v621_v30 }
 0x582   :  { %v584_v29 = vmul.f32 %v1696_v24, %v583_v41 }
 0x583   :  { %v634_v3 = vor.u32 1.1754944e-38, %v633_v61  ;;  %vm632_vm14 = vcmp.eq.f32.partialorder %v631_v63, 8.507059e+37 }
 0x584   :  { %v585_v37 = vadd.f32 %v1696_v24, %v584_v29 }
 0x586   :  { %v589_v45 = vsel %vm588_vm7, %v1696_v24, %v585_v37 }
 0x587   :  { %v594_v49 = vsel %vm591_vm8, %v593_v47, %v589_v45  ;;  %v1700_v52 = vpop.eup %1699 }
 0x588   :  { %v623_v54 = vmul.f32 %v1700_v52, %v621_v30  ;;  %vm628_vm9 = vweird.f32 %v1700_v52  ;;  %v601_v12 = vmul.f32 %v599_v11, %v594_v49 }
 0x589   :  { %vm629_vm13 = vmor %vm627_vm12, %vm628_vm9 }
 0x58a   :  { %v624_v55 = vsub.f32 1.0, %v623_v54 }
 0x58c   :  { %v625_v57 = vmul.f32 %v1700_v52, %v624_v55 }
 0x58e   :  { %v626_v59 = vadd.f32 %v1700_v52, %v625_v57 }
 0x590   :  { %v630_v1 = vsel %vm629_vm13, %v1700_v52, %v626_v59 }
 0x591   :  { %v635_v5 = vsel %vm632_vm14, %v634_v3, %v630_v1 }
 0x592   :  { %v638_v20 = vmul.f32 %v635_v5, %v2118_v40 }
 0x5cd   :  { %v604_v48 = vpop.permute.xlu2 %603 }
 0x5ce   :  { %v606_v50 = vmul.f32 %v604_v48, %v594_v49 }
 0x5d0   :  { %608 = vrot.lane.b32.xlu2 %v606_v50, %s1786_s21 }
 0x5e6   :  { %v641_v4 = vpop.permute.xlu0 %640 }
 0x5e7   :  { %v643_v8 = vmul.f32 %v641_v4, %v635_v5 }
 0x5e9   :  { %645 = vrot.lane.b32.xlu0 %v643_v8, %s1786_s21 }
 0x62a   :  { %v609_v17 = vpop.permute.xlu2 %608 }
 0x62b   :  { %v611_v18 = vadd.f32 %v609_v17, %v601_v12 }
 0x62d   :  { %1701 = vtanh.f32 %v611_v18 }
 0x633   :  { %v1702_v19 = vpop.eup %1701 }
 0x634   :  { %614 = vrot.lane.b32.xlu1 %v1702_v19, %s1787_s2 }
 0x65b   :  { %v646_v25 = vpop.permute.xlu0 %645 }
 0x65c   :  { %v648_v31 = vadd.f32 %v646_v25, %v638_v20 }
 0x65e   :  { %1703 = vtanh.f32 %v648_v31 }
 0x664   :  { %v1704_v32 = vpop.eup %1703 }
 0x665   :  { %651 = vrot.lane.b32.xlu2 %v1704_v32, %s1787_s2 }
 0x66d   :  { %666 = vrot.lane.b32.xlu2 %v611_v18, %s1788_s29 }
 0x6a6   :  { %v615_v33 = vpop.permute.xlu1 %614 }
 0x6a7   :  { %v617_v34 = vmul.f32 %v615_v33, %v594_v49  ;;  %v859_v33 = vld [vmem:[%s2372_s3 + $0x70] sm:$0xff] }
 0x6a8   :  { %872 = vmatpush.msra.mxu0 %v859_v33  ;;  %1033 = vmatpush.msrb.mxu2 %v859_v33 }
 0x6a9   :  { %656 = vrot.lane.b32.xlu0 %v617_v34, %s1786_s21  ;;  %v857_v34 = vld [vmem:[%s2372_s3 + $0x60] sm:$0xff] }
 0x6aa   :  { %873 = vmatpush.msra.mxu0 %v857_v34  ;;  %1034 = vmatpush.msrb.mxu2 %v857_v34 }
 0x6bf   :  { %v652_v26 = vpop.permute.xlu2 %651 }
 0x6c0   :  { %v654_v36 = vmul.f32 %v652_v26, %v635_v5  ;;  %v855_v26 = vld [vmem:[%s2372_s3 + $0x50] sm:$0xff] }
 0x6c1   :  { %874 = vmatpush.msra.mxu0 %v855_v26  ;;  %1035 = vmatpush.msrb.mxu2 %v855_v26 }
 0x6c2   :  { %661 = vrot.lane.b32.xlu1 %v654_v36, %s1787_s2 }
 0x6c7   :  { %v667_v38 = vpop.permute.xlu2 %666 }
 0x6c8   :  { %669 = vst.msk [vmem:[#allocation5] sm:$0xff] %vm320_vm10, %v667_v38 }
 0x6c9   :  { %670 = vst.msk [vmem:[#allocation5] sm:$0xff] %vm326_vm11, %v648_v31 }
 0x6d0   :  { %v2143_v40 = vld [vmem:[#allocation5] sm:$0xff] }
 0x6d1   :  { %767 = vrot.lane.b32.xlu2 %v2143_v40, %s1786_s21 }
 0x71b   :  { %v657_v42 = vpop.permute.xlu0 %656 }
 0x71c   :  { %659 = vst.msk [vmem:[#allocation4] sm:$0xff] %vm320_vm10, %v657_v42 }
 0x71d   :  { %672 = vst.msk [vmem:[#allocation3 + $0x10] sm:$0xff] %vm320_vm10, %v657_v42 }
 0x72b   :  { %v768_v5 = vpop.permute.xlu2 %767 }
 0x734   :  { %v662_v6 = vpop.permute.xlu1 %661 }
 0x735   :  { %664 = vst.msk [vmem:[#allocation4] sm:$0xff] %vm326_vm11, %v662_v6 }
 0x736   :  { %674 = vst.msk [vmem:[#allocation3 + $0x28] sm:$0xff] %vm326_vm11, %v662_v6  ;;  %v853_v6 = vld [vmem:[%s2372_s3 + $0x40] sm:$0xff] }
 0x737   :  { %875 = vmatpush.msra.mxu0 %v853_v6  ;;  %1036 = vmatpush.msrb.mxu2 %v853_v6 }
 0x73c   :  { %v675_v7 = vld [vmem:[#allocation4] sm:$0xff] }
 0x73d   :  { %1620 = vmatmul.msk.f32.vlgmr.msra.gmra.mxu2 %vm164_vm0, %v675_v7  ;;  %1621 = vmatmul.msk.f32.vlgmr.msra.gmra.mxu3 %vm164_vm0, %v675_v7  ;;  %v851_v7 = vld [vmem:[%s2372_s3 + $0x30] sm:$0xff] }
 0x73e   :  { %876 = vmatpush.msra.mxu0 %v851_v7  ;;  %1037 = vmatpush.msrb.mxu2 %v851_v7 }
 0x7c0   :  { %v712_v9 = vpop.f32.mrf.mxu2  ;;  %v732_v10 = vpop.f32.mrf.mxu3 }
 0x7c1   :  { %v739_v13 = vadd.f32 %v712_v9, %v2039_v35  ;;  %v744_v14 = vadd.f32 %v732_v10, %v2062_v62  ;;  %v849_v9 = vld [vmem:[%s2372_s3 + $0x20] sm:$0xff]  ;;  %v847_v10 = vld [vmem:[%s2372_s3 + $0x10] sm:$0xff] }
 0x7c2   :  { %877 = vmatpush.msra.mxu0 %v849_v9  ;;  %1038 = vmatpush.msrb.mxu2 %v849_v9 }
 0x7c3   :  { %1705 = vtanh.f32 %v739_v13  ;;  %v1622_v16 = vmul.f32 -1.442695, %v739_v13  ;;  %v1623_v22 = vmul.f32 -1.442695, %v744_v14  ;;  %v845_v13 = vld [vmem:[%s2372_s3] sm:$0xff] }
 0x7c4   :  { %1707 = vtanh.f32 %v744_v14  ;;  %878 = vmatpush.msra.mxu0 %v847_v10  ;;  %1039 = vmatpush.msrb.mxu2 %v847_v10 }
 0x7c5   :  { %1709 = vpow2.f32 %v1622_v16 }
 0x7c6   :  { %1711 = vpow2.f32 %v1623_v22  ;;  %879 = vmatpush.msra.mxu0 %v845_v13  ;;  %1040 = vmatpush.msrb.mxu2 %v845_v13 }
 0x7c8   :  { %1194 = vmatpush.msrb.mxu0 %v859_v33  ;;  %1355 = vmatpush.msra.mxu2 %v859_v33 }
 0x7c9   :  { %v1706_v15 = vpop.eup %1705 }
 0x7ca   :  { %v1708_v21 = vpop.eup %1707  ;;  %772 = vrot.lane.b32.xlu0 %v1706_v15, %s1787_s2  ;;  %1195 = vmatpush.msrb.mxu0 %v857_v34 }
 0x7cb   :  { %809 = vrot.lane.b32.xlu1 %v1708_v21, %s1787_s2  ;;  %v1710_v23 = vpop.eup %1709  ;;  %1356 = vmatpush.msra.mxu2 %v857_v34 }
 0x7cc   :  { %v1712_v24 = vpop.eup %1711  ;;  %v749_v27 = vadd.f32 1.0, %v1710_v23  ;;  %1196 = vmatpush.msrb.mxu0 %v855_v26 }
 0x7cd   :  { %v790_v28 = vadd.f32 1.0, %v1712_v24  ;;  %1357 = vmatpush.msra.mxu2 %v855_v26 }
 0x7ce   :  { %1713 = vrcp.f32 %v749_v27  ;;  %v761_v47 = vand.u32 2147483648, %v749_v27  ;;  %vm755_vm2 = vweird.f32 %v749_v27  ;;  %v759_v49 = vand.u32 2147483647, %v749_v27  ;;  %1197 = vmatpush.msrb.mxu0 %v853_v6 }
 0x7cf   :  { %1715 = vrcp.f32 %v790_v28  ;;  %v802_v48 = vand.u32 2147483648, %v790_v28  ;;  %vm796_vm3 = vweird.f32 %v790_v28  ;;  %v800_v50 = vand.u32 2147483647, %v790_v28  ;;  %1358 = vmatpush.msra.mxu2 %v853_v6 }
 0x7d0   :  { %v762_v55 = vor.u32 1.1754944e-38, %v761_v47  ;;  %vm760_vm6 = vcmp.eq.f32.partialorder %v759_v49, 8.507059e+37  ;;  %1198 = vmatpush.msrb.mxu0 %v851_v7 }
 0x7d1   :  { %v803_v57 = vor.u32 1.1754944e-38, %v802_v48  ;;  %vm801_vm7 = vcmp.eq.f32.partialorder %v800_v50, 8.507059e+37  ;;  %1359 = vmatpush.msra.mxu2 %v851_v7  ;;  %v1021_v7 = vld [vmem:[%s2372_s3 + $0x78] sm:$0xff] }
 0x7d2   :  { %1199 = vmatpush.msrb.mxu0 %v849_v9  ;;  %1053 = vmatpush.msrb.mxu3 %v1021_v7 }
 0x7d3   :  { %1360 = vmatpush.msra.mxu2 %v849_v9  ;;  %v1019_v9 = vld [vmem:[%s2372_s3 + $0x68] sm:$0xff]  ;;  %1214 = vmatpush.msrb.mxu1 %v1021_v7 }
 0x7d4   :  { %v1714_v35 = vpop.eup %1713  ;;  %1200 = vmatpush.msrb.mxu0 %v847_v10  ;;  %1054 = vmatpush.msrb.mxu3 %v1019_v9 }
 0x7d5   :  { %v1716_v62 = vpop.eup %1715  ;;  %v751_v41 = vmul.f32 %v1714_v35, %v749_v27  ;;  %vm756_vm15 = vweird.f32 %v1714_v35  ;;  %1361 = vmatpush.msra.mxu2 %v847_v10  ;;  %v1017_v10 = vld [vmem:[%s2372_s3 + $0x58] sm:$0xff]  ;;  %1215 = vmatpush.msrb.mxu1 %v1019_v9 }
 0x7d6   :  { %v792_v29 = vmul.f32 %v1716_v62, %v790_v28  ;;  %vm797_vm1 = vweird.f32 %v1716_v62  ;;  %vm757_vm4 = vmor %vm755_vm2, %vm756_vm15  ;;  %1201 = vmatpush.msrb.mxu0 %v845_v13  ;;  %1055 = vmatpush.msrb.mxu3 %v1017_v10 }
 0x7d7   :  { %v752_v0 = vsub.f32 1.0, %v751_v41  ;;  %vm798_vm5 = vmor %vm796_vm3, %vm797_vm1  ;;  %1362 = vmatpush.msra.mxu2 %v845_v13  ;;  %1216 = vmatpush.msrb.mxu1 %v1017_v10  ;;  %v1015_v13 = vld [vmem:[%s2372_s3 + $0x48] sm:$0xff] }
 0x7d8   :  { %v793_v30 = vsub.f32 1.0, %v792_v29  ;;  %1056 = vmatpush.msrb.mxu3 %v1015_v13 }
 0x7d9   :  { %v753_v37 = vmul.f32 %v1714_v35, %v752_v0  ;;  %1217 = vmatpush.msrb.mxu1 %v1015_v13 }
 0x7da   :  { %v794_v2 = vmul.f32 %v1716_v62, %v793_v30 }
 0x7db   :  { %v754_v43 = vadd.f32 %v1714_v35, %v753_v37 }
 0x7dc   :  { %v795_v45 = vadd.f32 %v1716_v62, %v794_v2 }
 0x7dd   :  { %v758_v52 = vsel %vm757_vm4, %v1714_v35, %v754_v43 }
 0x7de   :  { %v799_v54 = vsel %vm798_vm5, %v1716_v62, %v795_v45  ;;  %v763_v61 = vsel %vm760_vm6, %v762_v55, %v758_v52 }
 0x7df   :  { %v804_v1 = vsel %vm801_vm7, %v803_v57, %v799_v54  ;;  %v770_v8 = vmul.f32 %v768_v5, %v763_v61 }
 0x7e0   :  { %v807_v11 = vmul.f32 %v804_v1, %v2143_v40 }
 0x83c   :  { %v773_v59 = vpop.permute.xlu0 %772 }
 0x83d   :  { %v810_v63 = vpop.permute.xlu1 %809  ;;  %v775_v3 = vmul.f32 %v773_v59, %v763_v61 }
 0x83e   :  { %v812_v4 = vmul.f32 %v810_v63, %v804_v1 }
 0x83f   :  { %777 = vrot.lane.b32.xlu0 %v775_v3, %s1786_s21 }
 0x840   :  { %814 = vrot.lane.b32.xlu1 %v812_v4, %s1786_s21 }
 0x8b1   :  { %v778_v12 = vpop.permute.xlu0 %777 }
 0x8b2   :  { %v815_v17 = vpop.permute.xlu1 %814  ;;  %v780_v18 = vadd.f32 %v778_v12, %v770_v8 }
 0x8b3   :  { %v817_v19 = vadd.f32 %v815_v17, %v807_v11 }
 0x8b4   :  { %1717 = vtanh.f32 %v780_v18 }
 0x8b5   :  { %1719 = vtanh.f32 %v817_v19 }
 0x8ba   :  { %v1718_v20 = vpop.eup %1717 }
 0x8bb   :  { %v1720_v25 = vpop.eup %1719  ;;  %783 = vrot.lane.b32.xlu2 %v1718_v20, %s1787_s2 }
 0x8bc   :  { %820 = vrot.lane.b32.xlu0 %v1720_v25, %s1787_s2 }
 0x8c4   :  { %835 = vrot.lane.b32.xlu0 %v780_v18, %s1788_s29 }
 0x915   :  { %v784_v31 = vpop.permute.xlu2 %783 }
 0x916   :  { %v786_v32 = vmul.f32 %v784_v31, %v763_v61 }
 0x918   :  { %825 = vrot.lane.b32.xlu1 %v786_v32, %s1786_s21 }
 0x92e   :  { %v821_v36 = vpop.permute.xlu0 %820 }
 0x92f   :  { %v823_v38 = vmul.f32 %v821_v36, %v804_v1 }
 0x931   :  { %830 = vrot.lane.b32.xlu2 %v823_v38, %s1787_s2 }
 0x936   :  { %v836_v40 = vpop.permute.xlu0 %835 }
 0x937   :  { %838 = vst.msk [vmem:[#allocation5] sm:$0xff] %vm320_vm10, %v836_v40 }
 0x938   :  { %839 = vst.msk [vmem:[#allocation5] sm:$0xff] %vm326_vm11, %v817_v19 }
 0x93f   :  { %v2176_v42 = vld [vmem:[#allocation5] sm:$0xff] }
 0x940   :  { %930 = vrot.lane.b32.xlu0 %v2176_v42, %s1786_s21 }
 0x98a   :  { %v826_v14 = vpop.permute.xlu1 %825 }
 0x98b   :  { %828 = vst.msk [vmem:[#allocation4] sm:$0xff] %vm320_vm10, %v826_v14  ;;  %v831_v15 = vpop.permute.xlu2 %830 }
 0x98c   :  { %841 = vst.msk [vmem:[#allocation3 + $0x18] sm:$0xff] %vm320_vm10, %v826_v14  ;;  %v1013_v14 = vld [vmem:[%s2372_s3 + $0x38] sm:$0xff] }
 0x98d   :  { %833 = vst.msk [vmem:[#allocation4] sm:$0xff] %vm326_vm11, %v831_v15  ;;  %1057 = vmatpush.msrb.mxu3 %v1013_v14  ;;  %1218 = vmatpush.msrb.mxu1 %v1013_v14 }
 0x98e   :  { %843 = vst.msk [vmem:[#allocation3 + $0x20] sm:$0xff] %vm326_vm11, %v831_v15  ;;  %v1011_v15 = vld [vmem:[%s2372_s3 + $0x28] sm:$0xff] }
 0x98f   :  { %1058 = vmatpush.msrb.mxu3 %v1011_v15  ;;  %1219 = vmatpush.msrb.mxu1 %v1011_v15 }
 0x994   :  { %v844_v21 = vld [vmem:[#allocation4] sm:$0xff] }
 0x995   :  { %1624 = vmatmul.msk.f32.vlgmr.msra.gmra.mxu0 %vm164_vm0, %v844_v21  ;;  %1625 = vmatmul.msk.f32.vlgmr.msra.gmra.mxu1 %vm164_vm0, %v844_v21  ;;  %v1009_v21 = vld [vmem:[%s2372_s3 + $0x18] sm:$0xff] }
 0x996   :  { %1059 = vmatpush.msrb.mxu3 %v1009_v21  ;;  %1220 = vmatpush.msrb.mxu1 %v1009_v21 }
 0x9b2   :  { %v931_v25 = vpop.permute.xlu0 %930 }
 0xa12   :  { %v881_v16 = vpop.f32.mrf.mxu0  ;;  %v901_v22 = vpop.f32.mrf.mxu1 }
 0xa13   :  { %v905_v23 = vadd.f32 %v881_v16, %v2043_v39  ;;  %v907_v24 = vadd.f32 %v901_v22, %v2060_v60  ;;  %v1007_v16 = vld [vmem:[%s2372_s3 + $0x8] sm:$0xff] }
 0xa14   :  { %1060 = vmatpush.msrb.mxu3 %v1007_v16  ;;  %1221 = vmatpush.msrb.mxu1 %v1007_v16 }
 0xa15   :  { %1721 = vtanh.f32 %v905_v23  ;;  %v1627_v35 = vmul.f32 -1.442695, %v907_v24  ;;  %v1626_v0 = vmul.f32 -1.442695, %v905_v23 }
 0xa16   :  { %1723 = vtanh.f32 %v907_v24  ;;  %1375 = vmatpush.msra.mxu3 %v1021_v7 }
 0xa17   :  { %1725 = vpow2.f32 %v1627_v35 }
 0xa18   :  { %1376 = vmatpush.msra.mxu3 %v1019_v9 }
 0xa1a   :  { %1377 = vmatpush.msra.mxu3 %v1017_v10 }
 0xa1b   :  { %v1722_v27 = vpop.eup %1721 }
 0xa1c   :  { %v1724_v28 = vpop.eup %1723  ;;  %935 = vrot.lane.b32.xlu1 %v1722_v27, %s1787_s2  ;;  %1378 = vmatpush.msra.mxu3 %v1015_v13 }
 0xa1d   :  { %972 = vrot.lane.b32.xlu2 %v1724_v28, %s1787_s2  ;;  %v1726_v62 = vpop.eup %1725 }
 0xa1e   :  { %v953_v41 = vadd.f32 1.0, %v1726_v62  ;;  %1379 = vmatpush.msra.mxu3 %v1013_v14 }
 0xa20   :  { %1727 = vrcp.f32 %v953_v41  ;;  %v965_v45 = vand.u32 2147483648, %v953_v41  ;;  %vm959_vm9 = vweird.f32 %v953_v41  ;;  %v963_v47 = vand.u32 2147483647, %v953_v41  ;;  %1380 = vmatpush.msra.mxu3 %v1011_v15 }
 0xa21   :  { %1729 = vpow2.f32 %v1626_v0 }
 0xa22   :  { %v966_v49 = vor.u32 1.1754944e-38, %v965_v45  ;;  %vm964_vm13 = vcmp.eq.f32.partialorder %v963_v47, 8.507059e+37  ;;  %1381 = vmatpush.msra.mxu3 %v1009_v21 }
 0xa24   :  { %1382 = vmatpush.msra.mxu3 %v1007_v16 }
 0xa26   :  { %v1728_v29 = vpop.eup %1727 }
 0xa27   :  { %v955_v30 = vmul.f32 %v1728_v29, %v953_v41  ;;  %v1730_v37 = vpop.eup %1729  ;;  %vm960_vm8 = vweird.f32 %v1728_v29 }
 0xa28   :  { %v912_v2 = vadd.f32 1.0, %v1730_v37  ;;  %vm961_vm12 = vmor %vm959_vm9, %vm960_vm8 }
 0xa29   :  { %v956_v39 = vsub.f32 1.0, %v955_v30 }
 0xa2a   :  { %1731 = vrcp.f32 %v912_v2  ;;  %v924_v1 = vand.u32 2147483648, %v912_v2  ;;  %vm918_vm15 = vweird.f32 %v912_v2  ;;  %v922_v3 = vand.u32 2147483647, %v912_v2 }
 0xa2b   :  { %v957_v60 = vmul.f32 %v1728_v29, %v956_v39 }
 0xa2c   :  { %v925_v5 = vor.u32 1.1754944e-38, %v924_v1  ;;  %vm923_vm2 = vcmp.eq.f32.partialorder %v922_v3, 8.507059e+37 }
 0xa2d   :  { %v958_v43 = vadd.f32 %v1728_v29, %v957_v60 }
 0xa2f   :  { %v962_v48 = vsel %vm961_vm12, %v1728_v29, %v958_v43 }
 0xa30   :  { %v967_v52 = vsel %vm964_vm13, %v966_v49, %v962_v48  ;;  %v1732_v54 = vpop.eup %1731 }
 0xa31   :  { %v914_v57 = vmul.f32 %v1732_v54, %v912_v2  ;;  %vm919_vm14 = vweird.f32 %v1732_v54  ;;  %v970_v17 = vmul.f32 %v967_v52, %v2176_v42 }
 0xa32   :  { %vm920_vm1 = vmor %vm918_vm15, %vm919_vm14 }
 0xa33   :  { %v915_v59 = vsub.f32 1.0, %v914_v57 }
 0xa35   :  { %v916_v61 = vmul.f32 %v1732_v54, %v915_v59 }
 0xa37   :  { %v917_v63 = vadd.f32 %v1732_v54, %v916_v61 }
 0xa39   :  { %v921_v4 = vsel %vm920_vm1, %v1732_v54, %v917_v63 }
 0xa3a   :  { %v926_v11 = vsel %vm923_vm2, %v925_v5, %v921_v4 }
 0xa3b   :  { %v933_v31 = vmul.f32 %v931_v25, %v926_v11 }
 0xa77   :  { %v973_v50 = vpop.permute.xlu2 %972 }
 0xa78   :  { %v975_v55 = vmul.f32 %v973_v50, %v967_v52 }
 0xa7a   :  { %977 = vrot.lane.b32.xlu2 %v975_v55, %s1786_s21 }
 0xa8e   :  { %v936_v8 = vpop.permute.xlu1 %935 }
 0xa8f   :  { %v938_v12 = vmul.f32 %v936_v8, %v926_v11 }
 0xa91   :  { %940 = vrot.lane.b32.xlu1 %v938_v12, %s1786_s21 }
 0xad4   :  { %v978_v18 = vpop.permute.xlu2 %977 }
 0xad5   :  { %v980_v19 = vadd.f32 %v978_v18, %v970_v17 }
 0xad7   :  { %1733 = vtanh.f32 %v980_v19 }
 0xadd   :  { %v1734_v20 = vpop.eup %1733 }
 0xade   :  { %983 = vrot.lane.b32.xlu1 %v1734_v20, %s1787_s2 }
 0xb03   :  { %v941_v32 = vpop.permute.xlu1 %940 }
 0xb04   :  { %v943_v33 = vadd.f32 %v941_v32, %v933_v31 }
 0xb06   :  { %1735 = vtanh.f32 %v943_v33  ;;  %998 = vrot.lane.b32.xlu1 %v943_v33, %s1788_s29 }
 0xb0c   :  { %v1736_v34 = vpop.eup %1735 }
 0xb0d   :  { %946 = vrot.lane.b32.xlu0 %v1736_v34, %s1787_s2 }
 0xb50   :  { %v984_v26 = vpop.permute.xlu1 %983 }
 0xb51   :  { %v986_v36 = vmul.f32 %v984_v26, %v967_v52 }
 0xb53   :  { %993 = vrot.lane.b32.xlu0 %v986_v36, %s1787_s2 }
 0xb78   :  { %v999_v38 = vpop.permute.xlu1 %998 }
 0xb79   :  { %1001 = vst.msk [vmem:[#allocation5] sm:$0xff] %vm320_vm10, %v999_v38 }
 0xb7a   :  { %1002 = vst.msk [vmem:[#allocation5] sm:$0xff] %vm326_vm11, %v980_v19 }
 0xb7f   :  { %v947_v40 = vpop.permute.xlu0 %946 }
 0xb80   :  { %v949_v42 = vmul.f32 %v947_v40, %v926_v11 }
 0xb81   :  { %v2214_v6 = vld [vmem:[#allocation5] sm:$0xff] }
 0xb82   :  { %1091 = vrot.lane.b32.xlu1 %v2214_v6, %s1786_s21  ;;  %988 = vrot.lane.b32.xlu2 %v949_v42, %s1786_s21 }
 0xbc5   :  { %v994_v22 = vpop.permute.xlu0 %993 }
 0xbc6   :  { %1004 = vst.msk [vmem:[#allocation3 + $0x18] sm:$0xff] %vm326_vm11, %v994_v22 }
 0xbdc   :  { %v989_v23 = vpop.permute.xlu2 %988 }
 0xbdd   :  { %991 = vst.msk [vmem:[#allocation4] sm:$0xff] %vm320_vm10, %v989_v23 }
 0xbde   :  { %996 = vst.msk [vmem:[#allocation4] sm:$0xff] %vm326_vm11, %v994_v22 }
 0xbdf   :  { %1003 = vst.msk [vmem:[#allocation3 + $0x20] sm:$0xff] %vm320_vm10, %v989_v23 }
 0xbe5   :  { %v1005_v24 = vld [vmem:[#allocation4] sm:$0xff] }
 0xbe6   :  { %1628 = vmatmul.msk.f32.vlgmr.msrb.gmra.mxu2 %vm164_vm0, %v1005_v24  ;;  %1629 = vmatmul.msk.f32.vlgmr.msrb.gmra.mxu3 %vm164_vm0, %v1005_v24 }
 0xbf4   :  { %v1092_v19 = vpop.permute.xlu1 %1091 }
 0xc69   :  { %v1042_v27 = vpop.f32.mrf.mxu2  ;;  %v1062_v28 = vpop.f32.mrf.mxu3 }
 0xc6a   :  { %v1066_v35 = vadd.f32 %v1042_v27, %v2047_v44  ;;  %v1068_v62 = vadd.f32 %v1062_v28, %v2056_v56 }
 0xc6c   :  { %1737 = vtanh.f32 %v1066_v35  ;;  %v1630_v0 = vmul.f32 -1.442695, %v1066_v35  ;;  %v1631_v60 = vmul.f32 -1.442695, %v1068_v62 }
 0xc6d   :  { %1739 = vtanh.f32 %v1068_v62 }
 0xc6e   :  { %1741 = vpow2.f32 %v1630_v0 }
 0xc72   :  { %v1738_v41 = vpop.eup %1737 }
 0xc73   :  { %v1740_v29 = vpop.eup %1739  ;;  %1096 = vrot.lane.b32.xlu2 %v1738_v41, %s1787_s2 }
 0xc74   :  { %1133 = vrot.lane.b32.xlu0 %v1740_v29, %s1787_s2  ;;  %v1742_v30 = vpop.eup %1741 }
 0xc75   :  { %v1073_v39 = vadd.f32 1.0, %v1742_v30 }
 0xc77   :  { %1743 = vrcp.f32 %v1073_v39  ;;  %v1085_v48 = vand.u32 2147483648, %v1073_v39  ;;  %vm1079_vm4 = vweird.f32 %v1073_v39  ;;  %v1083_v49 = vand.u32 2147483647, %v1073_v39 }
 0xc78   :  { %1745 = vpow2.f32 %v1631_v60 }
 0xc79   :  { %v1086_v52 = vor.u32 1.1754944e-38, %v1085_v48  ;;  %vm1084_vm6 = vcmp.eq.f32.partialorder %v1083_v49, 8.507059e+37 }
 0xc7d   :  { %v1744_v37 = vpop.eup %1743 }
 0xc7e   :  { %v1075_v2 = vmul.f32 %v1744_v37, %v1073_v39  ;;  %v1746_v56 = vpop.eup %1745  ;;  %vm1080_vm3 = vweird.f32 %v1744_v37 }
 0xc7f   :  { %v1114_v45 = vadd.f32 1.0, %v1746_v56  ;;  %vm1081_vm5 = vmor %vm1079_vm4, %vm1080_vm3 }
 0xc80   :  { %v1076_v44 = vsub.f32 1.0, %v1075_v2 }
 0xc81   :  { %1747 = vrcp.f32 %v1114_v45  ;;  %v1126_v4 = vand.u32 2147483648, %v1114_v45  ;;  %vm1120_vm8 = vweird.f32 %v1114_v45  ;;  %v1124_v5 = vand.u32 2147483647, %v1114_v45 }
 0xc82   :  { %v1077_v43 = vmul.f32 %v1744_v37, %v1076_v44 }
 0xc83   :  { %v1127_v11 = vor.u32 1.1754944e-38, %v1126_v4  ;;  %vm1125_vm12 = vcmp.eq.f32.partialorder %v1124_v5, 8.507059e+37 }
 0xc84   :  { %v1078_v47 = vadd.f32 %v1744_v37, %v1077_v43 }
 0xc86   :  { %v1082_v50 = vsel %vm1081_vm5, %v1744_v37, %v1078_v47 }
 0xc87   :  { %v1087_v55 = vsel %vm1084_vm6, %v1086_v52, %v1082_v50  ;;  %v1748_v59 = vpop.eup %1747 }
 0xc88   :  { %v1116_v61 = vmul.f32 %v1748_v59, %v1114_v45  ;;  %vm1121_vm7 = vweird.f32 %v1748_v59  ;;  %v1094_v20 = vmul.f32 %v1092_v19, %v1087_v55 }
 0xc89   :  { %vm1122_vm9 = vmor %vm1120_vm8, %vm1121_vm7 }
 0xc8a   :  { %v1117_v63 = vsub.f32 1.0, %v1116_v61 }
 0xc8c   :  { %v1118_v1 = vmul.f32 %v1748_v59, %v1117_v63 }
 0xc8e   :  { %v1119_v3 = vadd.f32 %v1748_v59, %v1118_v1 }
 0xc90   :  { %v1123_v8 = vsel %vm1122_vm9, %v1748_v59, %v1119_v3 }
 0xc91   :  { %v1128_v17 = vsel %vm1125_vm12, %v1127_v11, %v1123_v8 }
 0xc92   :  { %v1131_v33 = vmul.f32 %v1128_v17, %v2214_v6 }
 0xccd   :  { %v1097_v54 = vpop.permute.xlu2 %1096 }
 0xcce   :  { %v1099_v57 = vmul.f32 %v1097_v54, %v1087_v55 }
 0xcd0   :  { %1101 = vrot.lane.b32.xlu2 %v1099_v57, %s1786_s21 }
 0xce6   :  { %v1134_v12 = vpop.permute.xlu0 %1133 }
 0xce7   :  { %v1136_v18 = vmul.f32 %v1134_v12, %v1128_v17 }
 0xce9   :  { %1138 = vrot.lane.b32.xlu0 %v1136_v18, %s1786_s21 }
 0xd2a   :  { %v1102_v25 = vpop.permute.xlu2 %1101 }
 0xd2b   :  { %v1104_v31 = vadd.f32 %v1102_v25, %v1094_v20 }
 0xd2d   :  { %1749 = vtanh.f32 %v1104_v31 }
 0xd33   :  { %v1750_v32 = vpop.eup %1749 }
 0xd34   :  { %1107 = vrot.lane.b32.xlu1 %v1750_v32, %s1787_s2 }
 0xd5b   :  { %v1139_v34 = vpop.permute.xlu0 %1138 }
 0xd5c   :  { %v1141_v26 = vadd.f32 %v1139_v34, %v1131_v33 }
 0xd5e   :  { %1751 = vtanh.f32 %v1141_v26 }
 0xd64   :  { %v1752_v36 = vpop.eup %1751 }
 0xd65   :  { %1144 = vrot.lane.b32.xlu2 %v1752_v36, %s1787_s2 }
 0xd6d   :  { %1159 = vrot.lane.b32.xlu2 %v1104_v31, %s1788_s29 }
 0xda6   :  { %v1108_v38 = vpop.permute.xlu1 %1107 }
 0xda7   :  { %v1110_v40 = vmul.f32 %v1108_v38, %v1087_v55 }
 0xda9   :  { %1149 = vrot.lane.b32.xlu0 %v1110_v40, %s1786_s21 }
 0xdbf   :  { %v1145_v42 = vpop.permute.xlu2 %1144 }
 0xdc0   :  { %v1147_v7 = vmul.f32 %v1145_v42, %v1128_v17 }
 0xdc2   :  { %1154 = vrot.lane.b32.xlu1 %v1147_v7, %s1787_s2 }
 0xdc7   :  { %v1160_v9 = vpop.permute.xlu2 %1159 }
 0xdc8   :  { %1162 = vst.msk [vmem:[#allocation5] sm:$0xff] %vm320_vm10, %v1160_v9 }
 0xdc9   :  { %1163 = vst.msk [vmem:[#allocation5] sm:$0xff] %vm326_vm11, %v1141_v26 }
 0xdd0   :  { %v2263_v6 = vld [vmem:[#allocation5] sm:$0xff] }
 0xdd1   :  { %1252 = vrot.lane.b32.xlu2 %v2263_v6, %s1786_s21 }
 0xe1b   :  { %v1150_v10 = vpop.permute.xlu0 %1149 }
 0xe1c   :  { %1152 = vst.msk [vmem:[#allocation4] sm:$0xff] %vm320_vm10, %v1150_v10 }
 0xe1d   :  { %1164 = vst.msk [vmem:[#allocation3 + $0x28] sm:$0xff] %vm320_vm10, %v1150_v10 }
 0xe2b   :  { %v1253_v3 = vpop.permute.xlu2 %1252 }
 0xe34   :  { %v1155_v13 = vpop.permute.xlu1 %1154 }
 0xe35   :  { %1157 = vst.msk [vmem:[#allocation4] sm:$0xff] %vm326_vm11, %v1155_v13 }
 0xe36   :  { %1165 = vst.msk [vmem:[#allocation3 + $0x10] sm:$0xff] %vm326_vm11, %v1155_v13 }
 0xe3c   :  { %v1166_v14 = vld [vmem:[#allocation4] sm:$0xff] }
 0xe3d   :  { %1632 = vmatmul.msk.f32.vlgmr.msrb.gmra.mxu0 %vm164_vm0, %v1166_v14  ;;  %1633 = vmatmul.msk.f32.vlgmr.msrb.gmra.mxu1 %vm164_vm0, %v1166_v14 }
 0xeba   :  { %v1203_v15 = vpop.f32.mrf.mxu0  ;;  %v1223_v21 = vpop.f32.mrf.mxu1 }
 0xebb   :  { %v1227_v16 = vadd.f32 %v1203_v15, %v2053_v53  ;;  %v1229_v22 = vadd.f32 %v1223_v21, %v2051_v51 }
 0xebd   :  { %1753 = vtanh.f32 %v1227_v16  ;;  %v1634_v27 = vmul.f32 -1.442695, %v1227_v16  ;;  %v1635_v28 = vmul.f32 -1.442695, %v1229_v22 }
 0xebe   :  { %1755 = vtanh.f32 %v1229_v22 }
 0xebf   :  { %1757 = vpow2.f32 %v1634_v27 }
 0xec0   :  { %1759 = vpow2.f32 %v1635_v28 }
 0xec3   :  { %v1754_v23 = vpop.eup %1753 }
 0xec4   :  { %v1756_v24 = vpop.eup %1755  ;;  %1257 = vrot.lane.b32.xlu0 %v1754_v23, %s1787_s2 }
 0xec5   :  { %1294 = vrot.lane.b32.xlu1 %v1756_v24, %s1787_s2  ;;  %v1758_v35 = vpop.eup %1757 }
 0xec6   :  { %v1760_v62 = vpop.eup %1759  ;;  %v1234_v41 = vadd.f32 1.0, %v1758_v35 }
 0xec7   :  { %v1275_v29 = vadd.f32 1.0, %v1760_v62 }
 0xec8   :  { %1761 = vrcp.f32 %v1234_v41  ;;  %v1246_v56 = vand.u32 2147483648, %v1234_v41  ;;  %vm1240_vm15 = vweird.f32 %v1234_v41  ;;  %v1244_v47 = vand.u32 2147483647, %v1234_v41 }
 0xec9   :  { %1763 = vrcp.f32 %v1275_v29  ;;  %v1287_v45 = vand.u32 2147483648, %v1275_v29  ;;  %vm1281_vm1 = vweird.f32 %v1275_v29  ;;  %v1285_v48 = vand.u32 2147483647, %v1275_v29 }
 0xeca   :  { %v1247_v52 = vor.u32 1.1754944e-38, %v1246_v56  ;;  %vm1245_vm4 = vcmp.eq.f32.partialorder %v1244_v47, 8.507059e+37 }
 0xecb   :  { %v1288_v54 = vor.u32 1.1754944e-38, %v1287_v45  ;;  %vm1286_vm5 = vcmp.eq.f32.partialorder %v1285_v48, 8.507059e+37 }
 0xece   :  { %v1762_v53 = vpop.eup %1761 }
 0xecf   :  { %v1764_v51 = vpop.eup %1763  ;;  %v1236_v0 = vmul.f32 %v1762_v53, %v1234_v41  ;;  %vm1241_vm13 = vweird.f32 %v1762_v53 }
 0xed0   :  { %v1277_v30 = vmul.f32 %v1764_v51, %v1275_v29  ;;  %vm1282_vm14 = vweird.f32 %v1764_v51  ;;  %vm1242_vm2 = vmor %vm1240_vm15, %vm1241_vm13 }
 0xed1   :  { %v1237_v39 = vsub.f32 1.0, %v1236_v0  ;;  %vm1283_vm3 = vmor %vm1281_vm1, %vm1282_vm14 }
 0xed2   :  { %v1278_v37 = vsub.f32 1.0, %v1277_v30 }
 0xed3   :  { %v1238_v60 = vmul.f32 %v1762_v53, %v1237_v39 }
 0xed4   :  { %v1279_v2 = vmul.f32 %v1764_v51, %v1278_v37 }
 0xed5   :  { %v1239_v44 = vadd.f32 %v1762_v53, %v1238_v60 }
 0xed6   :  { %v1280_v43 = vadd.f32 %v1764_v51, %v1279_v2 }
 0xed7   :  { %v1243_v49 = vsel %vm1242_vm2, %v1762_v53, %v1239_v44 }
 0xed8   :  { %v1284_v50 = vsel %vm1283_vm3, %v1764_v51, %v1280_v43  ;;  %v1248_v57 = vsel %vm1245_vm4, %v1247_v52, %v1243_v49 }
 0xed9   :  { %v1289_v61 = vsel %vm1286_vm5, %v1288_v54, %v1284_v50  ;;  %v1255_v4 = vmul.f32 %v1253_v3, %v1248_v57  ;;  %v1502_v3 = vld [vmem:[%s2374_s4 + $0x30] sm:$0xff] }
 0xeda   :  { %v1292_v5 = vmul.f32 %v1289_v61, %v2263_v6 }
 0xf36   :  { %v1258_v55 = vpop.permute.xlu0 %1257 }
 0xf37   :  { %v1295_v59 = vpop.permute.xlu1 %1294  ;;  %v1260_v63 = vmul.f32 %v1258_v55, %v1248_v57 }
 0xf38   :  { %v1297_v1 = vmul.f32 %v1295_v59, %v1289_v61 }
 0xf39   :  { %1262 = vrot.lane.b32.xlu0 %v1260_v63, %s1786_s21 }
 0xf3a   :  { %1299 = vrot.lane.b32.xlu1 %v1297_v1, %s1786_s21  ;;  %v1503_v1 = vld [vmem:[%s2374_s4 + $0x38] sm:$0xff] }
 0xf3b   :  { %1540 = vmatpush.msra.mxu0 %v1503_v1 }
 0xf3d   :  { %1541 = vmatpush.msra.mxu0 %v1502_v3 }
 0xfab   :  { %v1263_v8 = vpop.permute.xlu0 %1262 }
 0xfac   :  { %v1300_v11 = vpop.permute.xlu1 %1299  ;;  %v1265_v12 = vadd.f32 %v1263_v8, %v1255_v4  ;;  %v1501_v4 = vld [vmem:[%s2374_s4 + $0x28] sm:$0xff] }
 0xfad   :  { %v1302_v17 = vadd.f32 %v1300_v11, %v1292_v5  ;;  %v1500_v5 = vld [vmem:[%s2374_s4 + $0x20] sm:$0xff]  ;;  %1542 = vmatpush.msra.mxu0 %v1501_v4 }
 0xfae   :  { %1765 = vtanh.f32 %v1265_v12 }
 0xfaf   :  { %1767 = vtanh.f32 %v1302_v17  ;;  %1543 = vmatpush.msra.mxu0 %v1500_v5 }
 0xfb4   :  { %v1766_v18 = vpop.eup %1765 }
 0xfb5   :  { %v1768_v19 = vpop.eup %1767  ;;  %1268 = vrot.lane.b32.xlu2 %v1766_v18, %s1787_s2  ;;  %v1499_v18 = vld [vmem:[%s2374_s4 + $0x18] sm:$0xff] }
 0xfb6   :  { %1305 = vrot.lane.b32.xlu0 %v1768_v19, %s1787_s2  ;;  %v1498_v19 = vld [vmem:[%s2374_s4 + $0x10] sm:$0xff]  ;;  %1544 = vmatpush.msra.mxu0 %v1499_v18 }
 0xfb8   :  { %1545 = vmatpush.msra.mxu0 %v1498_v19 }
0x100f   :  { %v1269_v20 = vpop.permute.xlu2 %1268 }
0x1010   :  { %v1271_v25 = vmul.f32 %v1269_v20, %v1248_v57  ;;  %v1497_v20 = vld [vmem:[%s2374_s4 + $0x8] sm:$0xff] }
0x1011   :  { %1546 = vmatpush.msra.mxu0 %v1497_v20 }
0x1012   :  { %1310 = vrot.lane.b32.xlu1 %v1271_v25, %s1786_s21  ;;  %v1496_v25 = vld [vmem:[%s2374_s4] sm:$0xff] }
0x1013   :  { %1547 = vmatpush.msra.mxu0 %v1496_v25 }
0x101a   :  { %1320 = vrot.lane.b32.xlu1 %v1265_v12, %s1788_s29 }
0x1028   :  { %v1306_v31 = vpop.permute.xlu0 %1305 }
0x1029   :  { %v1308_v32 = vmul.f32 %v1306_v31, %v1289_v61 }
0x102b   :  { %1315 = vrot.lane.b32.xlu2 %v1308_v32, %s1787_s2 }
0x1084   :  { %v1311_v33 = vpop.permute.xlu1 %1310 }
0x1085   :  { %1313 = vst.msk [vmem:[#allocation4] sm:$0xff] %vm320_vm10, %v1311_v33  ;;  %v1316_v34 = vpop.permute.xlu2 %1315 }
0x1086   :  { %1325 = vst.msk [vmem:[#allocation3 + $0x30] sm:$0xff] %vm320_vm10, %v1311_v33 }
0x1087   :  { %1318 = vst.msk [vmem:[#allocation4] sm:$0xff] %vm326_vm11, %v1316_v34 }
0x1088   :  { %1326 = vst.msk [vmem:[#allocation3 + $0x8] sm:$0xff] %vm326_vm11, %v1316_v34 }
0x108c   :  { %v1321_v26 = vpop.permute.xlu1 %1320 }
0x108d   :  { %1323 = vst.msk [vmem:[#allocation5] sm:$0xff] %vm320_vm10, %v1321_v26 }
0x108e   :  { %1324 = vst.msk [vmem:[#allocation5] sm:$0xff] %vm326_vm11, %v1302_v17  ;;  %v1327_v36 = vld [vmem:[#allocation4] sm:$0xff] }
0x108f   :  { %1636 = vmatmul.msk.f32.vlgmr.msra.gmra.mxu2 %vm164_vm0, %v1327_v36  ;;  %1637 = vmatmul.msk.f32.vlgmr.msra.gmra.mxu3 %vm164_vm0, %v1327_v36  ;;  %v1489_v26 = vld [vmem:[#allocation3 + $0x8] sm:$0xff]  ;;  %v1490_v36 = vld [vmem:[#allocation3 + $0x10] sm:$0xff] }
0x1095   :  { %v1391_v48 = vld [vmem:[#allocation5] sm:$0xff] }
0x1112   :  { %v1384_v38 = vpop.f32.mrf.mxu3  ;;  %v1364_v42 = vpop.f32.mrf.mxu2 }
0x1113   :  { %v1390_v40 = vadd.f32 %v1384_v38, %v2049_v46  ;;  %v1388_v7 = vadd.f32 %v1364_v42, %v2058_v58  ;;  %v1491_v38 = vld [vmem:[#allocation3 + $0x18] sm:$0xff]  ;;  %v1493_v42 = vld [vmem:[#allocation3 + $0x28] sm:$0xff] }
0x1115   :  { %1769 = vtanh.f32 %v1390_v40  ;;  %v1639_v10 = vmul.f32 -1.442695, %v1390_v40  ;;  %v1638_v13 = vmul.f32 -1.442695, %v1388_v7  ;;  %v1492_v40 = vld [vmem:[#allocation3 + $0x20] sm:$0xff] }
0x1116   :  { %1771 = vtanh.f32 %v1388_v7  ;;  %v1494_v7 = vld [vmem:[#allocation3 + $0x30] sm:$0xff] }
0x1117   :  { %1773 = vpow2.f32 %v1639_v10 }
0x1118   :  { %1775 = vpow2.f32 %v1638_v13 }
0x111b   :  { %v1770_v9 = vpop.eup %1769 }
0x111c   :  { %1455 = vrot.lane.b32.xlu0 %v1770_v9, %s1787_s2  ;;  %v1772_v6 = vpop.eup %1771 }
0x111d   :  { %v1774_v14 = vpop.eup %1773 }
0x111e   :  { %v1436_v15 = vadd.f32 1.0, %v1774_v14  ;;  %v1776_v21 = vpop.eup %1775 }
0x111f   :  { %v1395_v46 = vadd.f32 1.0, %v1776_v21 }
0x1120   :  { %1777 = vrcp.f32 %v1436_v15  ;;  %v1448_v62 = vand.u32 2147483648, %v1436_v15  ;;  %vm1442_vm7 = vweird.f32 %v1436_v15  ;;  %v1446_v41 = vand.u32 2147483647, %v1436_v15 }
0x1121   :  { %1779 = vrcp.f32 %v1395_v46  ;;  %v1407_v60 = vand.u32 2147483648, %v1395_v46  ;;  %vm1401_vm13 = vweird.f32 %v1395_v46  ;;  %v1405_v2 = vand.u32 2147483647, %v1395_v46 }
0x1122   :  { %v1449_v51 = vor.u32 1.1754944e-38, %v1448_v62  ;;  %vm1447_vm9 = vcmp.eq.f32.partialorder %v1446_v41, 8.507059e+37 }
0x1123   :  { %v1408_v43 = vor.u32 1.1754944e-38, %v1407_v60  ;;  %vm1406_vm15 = vcmp.eq.f32.partialorder %v1405_v2, 8.507059e+37 }
0x1124   :  { %1418 = vrot.lane.b32.xlu0 %v1772_v6, %s1787_s2  ;;  %v1656_v6 = vld [vmem:[%s2375_s5] ss:$0 sm:$0xff] }
0x1126   :  { %v1778_v16 = vpop.eup %1777 }
0x1127   :  { %v1438_v22 = vmul.f32 %v1778_v16, %v1436_v15  ;;  %v1780_v23 = vpop.eup %1779  ;;  %vm1443_vm6 = vweird.f32 %v1778_v16 }
0x1128   :  { %v1397_v27 = vmul.f32 %v1780_v23, %v1395_v46  ;;  %vm1444_vm8 = vmor %vm1442_vm7, %vm1443_vm6  ;;  %vm1402_vm12 = vweird.f32 %v1780_v23 }
0x1129   :  { %v1439_v58 = vsub.f32 1.0, %v1438_v22  ;;  %vm1403_vm14 = vmor %vm1401_vm13, %vm1402_vm12 }
0x112a   :  { %v1398_v35 = vsub.f32 1.0, %v1397_v27 }
0x112b   :  { %v1440_v24 = vmul.f32 %v1778_v16, %v1439_v58 }
0x112c   :  { %v1399_v53 = vmul.f32 %v1780_v23, %v1398_v35 }
0x112d   :  { %v1441_v28 = vadd.f32 %v1778_v16, %v1440_v24 }
0x112e   :  { %v1400_v37 = vadd.f32 %v1780_v23, %v1399_v53 }
0x112f   :  { %v1445_v29 = vsel %vm1444_vm8, %v1778_v16, %v1441_v28 }
0x1130   :  { %v1450_v30 = vsel %vm1447_vm9, %v1449_v51, %v1445_v29  ;;  %v1404_v44 = vsel %vm1403_vm14, %v1780_v23, %v1400_v37 }
0x1131   :  { %v1409_v45 = vsel %vm1406_vm15, %v1408_v43, %v1404_v44  ;;  %v1453_v49 = vmul.f32 %v1450_v30, %v1391_v48 }
0x118e   :  { %v1456_v0 = vpop.permute.xlu0 %1455 }
0x118f   :  { %v1458_v39 = vmul.f32 %v1456_v0, %v1450_v30 }
0x1191   :  { %1460 = vrot.lane.b32.xlu2 %v1458_v39, %s1786_s21 }
0x1196   :  { %v1419_v56 = vpop.permute.xlu0 %1418 }
0x1197   :  { %v1421_v47 = vmul.f32 %v1419_v56, %v1409_v45 }
0x1199   :  { %1413 = vrot.lane.b32.xlu2 %v1391_v48, %s1786_s21  ;;  %1423 = vrot.lane.b32.xlu0 %v1421_v47, %s1786_s21 }
0x11eb   :  { %v1461_v50 = vpop.permute.xlu2 %1460 }
0x11ec   :  { %v1463_v52 = vadd.f32 %v1461_v50, %v1453_v49 }
0x11ee   :  { %1781 = vtanh.f32 %v1463_v52 }
0x11f3   :  { %v1414_v55 = vpop.permute.xlu2 %1413 }
0x11f4   :  { %v1782_v54 = vpop.eup %1781  ;;  %v1416_v57 = vmul.f32 %v1414_v55, %v1409_v45 }
0x11f5   :  { %1466 = vrot.lane.b32.xlu1 %v1782_v54, %s1787_s2 }
0x120b   :  { %v1424_v59 = vpop.permute.xlu0 %1423 }
0x120c   :  { %v1426_v61 = vadd.f32 %v1424_v59, %v1416_v57 }
0x120e   :  { %1783 = vtanh.f32 %v1426_v61 }
0x1214   :  { %v1784_v63 = vpop.eup %1783 }
0x1215   :  { %1429 = vrot.lane.b32.xlu2 %v1784_v63, %s1787_s2 }
0x1267   :  { %v1467_v8 = vpop.permute.xlu1 %1466 }
0x1268   :  { %v1469_v11 = vmul.f32 %v1467_v8, %v1450_v30 }
0x126a   :  { %1476 = vrot.lane.b32.xlu1 %v1469_v11, %s1787_s2 }
0x126f   :  { %v1430_v12 = vpop.permute.xlu2 %1429 }
0x1270   :  { %v1432_v17 = vmul.f32 %v1430_v12, %v1409_v45 }
0x1272   :  { %1481 = vrot.lane.b32.xlu1 %v1426_v61, %s1788_s29  ;;  %1471 = vrot.lane.b32.xlu0 %v1432_v17, %s1786_s21 }
0x12dc   :  { %v1477_v31 = vpop.permute.xlu1 %1476 }
0x12dd   :  { %1487 = vst.msk [vmem:[#allocation3] sm:$0xff] %vm326_vm11, %v1477_v31 }
0x12e4   :  { %v1482_v32 = vpop.permute.xlu1 %1481  ;;  %v1472_v33 = vpop.permute.xlu0 %1471  ;;  %v1488_v34 = vld [vmem:[#allocation3] sm:$0xff] }
0x12e5   :  { %1484 = vst.msk [vmem:[#allocation5] sm:$0xff] %vm320_vm10, %v1482_v32  ;;  %1640 = vmatmul.msk.f32.vlgmr.msra.gmra.mxu0 %vm164_vm0, %v1488_v34 }
0x12e6   :  { %1485 = vst.msk [vmem:[#allocation5] sm:$0xff] %vm326_vm11, %v1463_v52 }
0x12e7   :  { %1474 = vst.msk [vmem:[#allocation4] sm:$0xff] %vm320_vm10, %v1472_v33 }
0x12e8   :  { %1479 = vst.msk [vmem:[#allocation4] sm:$0xff] %vm326_vm11, %v1477_v31 }
0x12e9   :  { %1486 = vst.msk [vmem:[#allocation3 + $0x38] sm:$0xff] %vm320_vm10, %v1472_v33 }
0x12ed   :  { %1641 = vmatmul.msk.f32.gmra.mxu0 %vm164_vm0, %v1489_v26 }
0x12f0   :  { %v1495_v9 = vld [vmem:[#allocation3 + $0x38] sm:$0xff] }
0x12f5   :  { %1642 = vmatmul.msk.f32.gmra.mxu0 %vm164_vm0, %v1490_v36 }
0x12fd   :  { %1643 = vmatmul.msk.f32.gmra.mxu0 %vm164_vm0, %v1491_v38 }
0x1305   :  { %1644 = vmatmul.msk.f32.gmra.mxu0 %vm164_vm0, %v1492_v40 }
0x130d   :  { %1645 = vmatmul.msk.f32.gmra.mxu0 %vm164_vm0, %v1493_v42 }
0x1315   :  { %1646 = vmatmul.msk.f32.gmra.mxu0 %vm164_vm0, %v1494_v7 }
0x131d   :  { %1647 = vmatmul.msk.f32.gmra.mxu0 %vm164_vm0, %v1495_v9 }
0x1362   :  { %v1549_v10 = vpop.f32.mrf.mxu0 }
0x1363   :  { %v1550_v13 = vadd.f32 %v1656_v6, %v1549_v10 }
0x1365   :  { %1573 = vst [vmem:[%s2376_s6] sm:$0xff] %v1550_v13 }
0x136a   :  { %v1552_v14 = vpop.f32.mrf.mxu0 }
0x136b   :  { %v1553_v15 = vadd.f32 %v1656_v6, %v1552_v14 }
0x136d   :  { %1574 = vst [vmem:[%s2376_s6 + $0x8] sm:$0xff] %v1553_v15 }
0x1372   :  { %v1555_v21 = vpop.f32.mrf.mxu0 }
0x1373   :  { %v1556_v46 = vadd.f32 %v1656_v6, %v1555_v21 }
0x1375   :  { %1575 = vst [vmem:[%s2376_s6 + $0x10] sm:$0xff] %v1556_v46 }
0x137a   :  { %v1558_v16 = vpop.f32.mrf.mxu0 }
0x137b   :  { %v1559_v22 = vadd.f32 %v1656_v6, %v1558_v16 }
0x137d   :  { %1576 = vst [vmem:[%s2376_s6 + $0x18] sm:$0xff] %v1559_v22 }
0x1382   :  { %v1561_v58 = vpop.f32.mrf.mxu0 }
0x1383   :  { %v1562_v23 = vadd.f32 %v1656_v6, %v1561_v58 }
0x1385   :  { %1577 = vst [vmem:[%s2376_s6 + $0x20] sm:$0xff] %v1562_v23 }
0x138a   :  { %v1564_v24 = vpop.f32.mrf.mxu0 }
0x138b   :  { %v1565_v27 = vadd.f32 %v1656_v6, %v1564_v24 }
0x138d   :  { %1578 = vst [vmem:[%s2376_s6 + $0x28] sm:$0xff] %v1565_v27 }
0x1392   :  { %v1567_v28 = vpop.f32.mrf.mxu0 }
0x1393   :  { %v1568_v35 = vadd.f32 %v1656_v6, %v1567_v28 }
0x1395   :  { %1579 = vst [vmem:[%s2376_s6 + $0x30] sm:$0xff] %v1568_v35 }
0x139a   :  { %v1570_v62 = vpop.f32.mrf.mxu0 }
0x139b   :  { %v1571_v41 = vadd.f32 %v1656_v6, %v1570_v62 }
0x139d   :  { %1580 = vst [vmem:[%s2376_s6 + $0x38] sm:$0xff] %v1571_v41 }

</bundles_post_ra>
